<compile_context>
chip_gen: v6e
topology: v6e:2x2x1
jax: 0.10.0
libtpu: 0.0.40
codegen_flags: <defaults>
</compile_context>

<pallas_src>
import jax
import jax.numpy as jnp
from jax.experimental import pallas as pl
from jax.experimental.pallas import tpu as pltpu


# ----------------------------------------------------------------------------
# helpers
# ----------------------------------------------------------------------------
def _pick_block(total, target, quantum=1):
    """Largest block <= target that divides `total` and is a multiple of `quantum`;
    falls back to the whole extent (full-dim blocks are always legal)."""
    if total <= target:
        return total
    for cand in range(target, 0, -1):
        if total % cand == 0 and cand % quantum == 0:
            return cand
    return total


def _compiler_params(dim_sems):
    return pltpu.CompilerParams(
        dimension_semantics=dim_sems,
        vmem_limit_bytes=32 * 1024 * 1024,   # safe on v5e/v6e/v7x; tiles budgeted below it
    )


# ----------------------------------------------------------------------------
# fused bidirectional recurrence kernel (projection + both directions per step)
# ----------------------------------------------------------------------------
def _bilstm_kernel(xf_ref, xb_ref, wihf_ref, wihb_ref, bf_ref, bb_ref, whh_ref,
                   hf_out_ref, hb_out_ref,
                   xpf_sc, xpb_sc, h_sc, cf_sc, cb_sc):
    """
    xf_ref/xb_ref : (tt*B, I)  bf16  forward / mirrored time block of x (rows = t*B+b)
    wih*_ref      : (I, 4H)    bf16  input->gate weights (g columns pre-scaled by 2)
    b*_ref        : (1, 4H)    f32   b_ih + b_hh (g slice pre-scaled by 2)
    whh_ref       : (2H, 8H)   bf16  block-diag recurrent weights for both directions
    h*_out_ref    : (tt*B, H)  f32   per-step hidden states (time-aligned)
    xp*_sc        : (tt*B, 4H) f32   block-local x projections
    h_sc          : (B, 2H)    f32   [h_fwd | h_bwd] carry
    cf_sc, cb_sc  : (B, H)     f32   cell-state carries
    """
    H4 = wihf_ref.shape[1]
    H = H4 // 4
    B = h_sc.shape[0]
    tt = xf_ref.shape[0] // B

    @pl.when(pl.program_id(0) == 0)
    def _init():
        h_sc[...] = jnp.zeros_like(h_sc)
        cf_sc[...] = jnp.zeros_like(cf_sc)
        cb_sc[...] = jnp.zeros_like(cb_sc)

    # Block-entry input projection for both directions (hoisted off the serial
    # per-step chain, bias folded in): (tt*B, I) @ (I, 4H) on the MXU.
    xpf_sc[...] = jnp.dot(xf_ref[...], wihf_ref[...],
                          preferred_element_type=jnp.float32) + bf_ref[...]
    xpb_sc[...] = jnp.dot(xb_ref[...], wihb_ref[...],
                          preferred_element_type=jnp.float32) + bb_ref[...]

    whh = whh_ref[...]                                  # loop-invariant (2H, 8H) bf16

    def one_step(j):
        rf = pl.multiple_of(j * B, B)                   # forward local row offset
        rb = pl.multiple_of((tt - 1 - j) * B, B)        # backward local row offset
        # single block-diagonal recurrent matmul for BOTH directions
        mm = jnp.dot(h_sc[...].astype(jnp.bfloat16), whh,
                     preferred_element_type=jnp.float32)          # (B, 8H)
        gates_f = xpf_sc[pl.ds(rf, B)] + mm[:, :H4]               # (B, 4H) [i,f,g,o]
        gates_b = xpb_sc[pl.ds(rb, B)] + mm[:, H4:]
        # one EUP pass per direction over the full 4H width; g columns were pre-scaled
        # by 2 at weight-prep time so tanh(z) = 2*sigmoid(2z) - 1.
        s_f = jax.nn.sigmoid(gates_f)
        s_b = jax.nn.sigmoid(gates_b)
        i_f, f_f = s_f[:, 0:H], s_f[:, H:2 * H]
        g_f, o_f = 2.0 * s_f[:, 2 * H:3 * H] - 1.0, s_f[:, 3 * H:4 * H]
        i_b, f_b = s_b[:, 0:H], s_b[:, H:2 * H]
        g_b, o_b = 2.0 * s_b[:, 2 * H:3 * H] - 1.0, s_b[:, 3 * H:4 * H]
        c_f = f_f * cf_sc[...] + i_f * g_f
        c_b = f_b * cb_sc[...] + i_b * g_b
        h_f = o_f * jnp.tanh(c_f)
        h_b = o_b * jnp.tanh(c_b)
        cf_sc[...] = c_f
        cb_sc[...] = c_b
        h_sc[:, 0:H] = h_f
        h_sc[:, H:2 * H] = h_b
        hf_out_ref[pl.ds(rf, B)] = h_f                  # time-aligned stores
        hb_out_ref[pl.ds(rb, B)] = h_b

    unroll = 4 if tt % 4 == 0 else (2 if tt % 2 == 0 else 1)

    def body(jj, carry):
        for u in range(unroll):                         # manual unroll for LLO visibility
            one_step(jj * unroll + u)
        return carry

    jax.lax.fori_loop(0, tt // unroll, body, 0)


def _run_bilstm(x2d, w_ih_f, w_ih_b, b_f, b_b, w_hh_cat, T, B_pad, H, tt):
    N = T * B_pad
    nT = T // tt
    I = x2d.shape[1]
    row_blk = tt * B_pad

    fwd_map = lambda t: (t, 0)
    bwd_map = lambda t: (nT - 1 - t, 0)                 # mirrored block order (no x[::-1])

    grid_spec = pltpu.PrefetchScalarGridSpec(
        num_scalar_prefetch=0,
        grid=(nT,),
        in_specs=[
            pl.BlockSpec((row_blk, I), fwd_map),
            pl.BlockSpec((row_blk, I), bwd_map),
            pl.BlockSpec((I, 4 * H), lambda t: (0, 0)),
            pl.BlockSpec((I, 4 * H), lambda t: (0, 0)),
            pl.BlockSpec((1, 4 * H), lambda t: (0, 0)),
            pl.BlockSpec((1, 4 * H), lambda t: (0, 0)),
            pl.BlockSpec((2 * H, 8 * H), lambda t: (0, 0)),
        ],
        out_specs=[
            pl.BlockSpec((row_blk, H), fwd_map),
            pl.BlockSpec((row_blk, H), bwd_map),
        ],
        scratch_shapes=[
            pltpu.VMEM((row_blk, 4 * H), jnp.float32),  # x-proj fwd
            pltpu.VMEM((row_blk, 4 * H), jnp.float32),  # x-proj bwd
            pltpu.VMEM((B_pad, 2 * H), jnp.float32),    # [h_f | h_b] carry
            pltpu.VMEM((B_pad, H), jnp.float32),        # c_f carry
            pltpu.VMEM((B_pad, H), jnp.float32),        # c_b carry
        ],
    )
    return pl.pallas_call(
        _bilstm_kernel,
        out_shape=(jax.ShapeDtypeStruct((N, H), jnp.float32),
                   jax.ShapeDtypeStruct((N, H), jnp.float32)),
        grid_spec=grid_spec,
        compiler_params=_compiler_params(("arbitrary",)),   # carries -> sequential
    )(x2d, x2d, w_ih_f, w_ih_b, b_f, b_b, w_hh_cat)


# ----------------------------------------------------------------------------
# output linear kernel: o = h_fwd @ W1 + h_bwd @ W2 + b  (no concat materialised)
# ----------------------------------------------------------------------------
def _linear_kernel(hf_ref, hb_ref, w1_ref, w2_ref, b_ref, o_ref):
    o_ref[...] = (
        jnp.dot(hf_ref[...].astype(jnp.bfloat16), w1_ref[...],
                preferred_element_type=jnp.float32)
        + jnp.dot(hb_ref[...].astype(jnp.bfloat16), w2_ref[...],
                  preferred_element_type=jnp.float32)
        + b_ref[...]
    )


def _run_linear(h_fwd2d, h_bwd2d, w1, w2, b):
    N, H = h_fwd2d.shape
    O = w1.shape[1]
    rb = _pick_block(N, 1024, quantum=8)
    return pl.pallas_call(
        _linear_kernel,
        out_shape=jax.ShapeDtypeStruct((N, O), jnp.float32),
        grid_spec=pltpu.PrefetchScalarGridSpec(
            num_scalar_prefetch=0,
            grid=(N // rb,),
            in_specs=[
                pl.BlockSpec((rb, H), lambda i: (i, 0)),
                pl.BlockSpec((rb, H), lambda i: (i, 0)),
                pl.BlockSpec((H, O), lambda i: (0, 0)),
                pl.BlockSpec((H, O), lambda i: (0, 0)),
                pl.BlockSpec((1, O), lambda i: (0, 0)),
            ],
            out_specs=pl.BlockSpec((rb, O), lambda i: (i, 0)),
        ),
        compiler_params=_compiler_params(("parallel",)),
    )(h_fwd2d, h_bwd2d, w1, w2, b)


# ----------------------------------------------------------------------------
# full forward
# ----------------------------------------------------------------------------
@jax.jit
def bidirectional_lstm_forward(x, params):
    """x: (B, T, input_size) f32  ->  (B, T, output_size) f32."""
    B, T, I = x.shape
    H = params["w_hh_f"].shape[1]
    O = params["w_lin"].shape[0]
    B_pad = max(8, ((B + 7) // 8) * 8)       # 8-sublane-aligned per-step row tiles

    # ---- weight prep (tiny; fused by XLA) -----------------------------------
    def prep_dir(w_ih, w_hh, b_ih, b_hh):
        # scale g-gate rows by 2 so tanh(z) = 2*sigmoid(2z) - 1 (single sigmoid pass)
        g_scale = jnp.concatenate(
            [jnp.ones((2 * H,), jnp.float32), jnp.full((H,), 2.0, jnp.float32),
             jnp.ones((H,), jnp.float32)])[:, None]                      # (4H, 1)
        w_ih_s = (w_ih * g_scale).T.astype(jnp.bfloat16)                 # (I, 4H)
        w_hh_s = (w_hh * g_scale).T.astype(jnp.bfloat16)                 # (H, 4H)
        b = ((b_ih + b_hh) * g_scale[:, 0])[None, :].astype(jnp.float32) # (1, 4H)
        return w_ih_s, w_hh_s, b

    w_ih_f, w_hh_f, b_f = prep_dir(params["w_ih_f"], params["w_hh_f"],
                                   params["b_ih_f"], params["b_hh_f"])
    w_ih_b, w_hh_b, b_b = prep_dir(params["w_ih_b"], params["w_hh_b"],
                                   params["b_ih_b"], params["b_hh_b"])
    # block-diagonal recurrent weight: [h_f | h_b] (B,2H) @ (2H,8H) -> [gates_f | gates_b]
    zeros = jnp.zeros((H, 4 * H), jnp.bfloat16)
    w_hh_cat = jnp.concatenate(
        [jnp.concatenate([w_hh_f, zeros], axis=1),
         jnp.concatenate([zeros, w_hh_b], axis=1)], axis=0)              # (2H, 8H)

    w_lin_f = params["w_lin"][:, :H].T.astype(jnp.bfloat16)              # (H, O)
    w_lin_b = params["w_lin"][:, H:].T.astype(jnp.bfloat16)              # (H, O)
    b_lin = params["b_lin"][None, :].astype(jnp.float32)                 # (1, O)

    # ---- activation layout: pad batch to 8, rows = t*B_pad + b --------------
    x_p = jnp.pad(x, ((0, B_pad - B), (0, 0), (0, 0)))
    x2d = jnp.transpose(x_p, (1, 0, 2)).reshape(T * B_pad, I).astype(jnp.bfloat16)

    # time tile: as large as possible while double-buffered x / h blocks + the
    # xproj scratch stay far under the 32 MiB VMEM budget on all generations.
    # NOTE: falls back to tt = T when T has no divisor <= target (e.g. prime T).
    tt = _pick_block(T, max(1, min(256, 2048 // B_pad)))

    # ---- fused recurrence (projection + both directions per step) -----------
    h_fwd, h_bwd = _run_bilstm(x2d, w_ih_f, w_ih_b, b_f, b_b, w_hh_cat,
                               T, B_pad, H, tt)                          # (T*B_pad, H) x2

    # ---- output linear -------------------------------------------------------
    out2d = _run_linear(h_fwd, h_bwd, w_lin_f, w_lin_b, b_lin)           # (T*B_pad, O)
    out = out2d.reshape(T, B_pad, O)[:, :B, :]
    return jnp.transpose(out, (1, 0, 2))                                 # (B, T, O)


# ----------------------------------------------------------------------------
# Pure-JAX reference (mirrors the kernel's bf16 MXU-operand casts)
# ----------------------------------------------------------------------------
def _reference_forward(x, params):
    B, T, I = x.shape
    H = params["w_hh_f"].shape[1]

    def bf(a):
        return a.astype(jnp.bfloat16).astype(jnp.float32)

    def run_dir(x_tm, w_ih, w_hh, b_ih, b_hh, reverse):
        w_ih_t = bf(w_ih.T)
        w_hh_t = bf(w_hh.T)
        b = (b_ih + b_hh)[None, :]
        xs = bf(x_tm[::-1] if reverse else x_tm)

        def step(carry, xt):
            h, c = carry
            gates = xt @ w_ih_t + b + bf(h) @ w_hh_t
            i = jax.nn.sigmoid(gates[:, 0 * H:1 * H])
            f = jax.nn.sigmoid(gates[:, 1 * H:2 * H])
            g = jnp.tanh(gates[:, 2 * H:3 * H])
            o = jax.nn.sigmoid(gates[:, 3 * H:4 * H])
            c = f * c + i * g
            h = o * jnp.tanh(c)
            return (h, c), h

        init = (jnp.zeros((B, H), jnp.float32), jnp.zeros((B, H), jnp.float32))
        _, hs = jax.lax.scan(step, init, xs)
        return hs[::-1] if reverse else hs

    x_tm = jnp.transpose(x, (1, 0, 2))
    h_f = run_dir(x_tm, params["w_ih_f"], params["w_hh_f"],
                  params["b_ih_f"], params["b_hh_f"], reverse=False)
    h_b = run_dir(x_tm, params["w_ih_b"], params["w_hh_b"],
                  params["b_ih_b"], params["b_hh_b"], reverse=True)
    out = (bf(h_f) @ bf(params["w_lin"][:, :H].T)
           + bf(h_b) @ bf(params["w_lin"][:, H:].T)
           + params["b_lin"][None, None, :])
    return jnp.transpose(out, (1, 0, 2))


# ----------------------------------------------------------------------------
# Deterministic parameter init (PyTorch-style uniform(-1/sqrt(H), 1/sqrt(H)))
# ----------------------------------------------------------------------------
def init_params(key, input_size, hidden_size, output_size):
    k = jax.random.split(key, 10)
    bound = 1.0 / jnp.sqrt(hidden_size)

    def u(kk, shape):
        return jax.random.uniform(kk, shape, jnp.float32, -bound, bound)

    return {
        "w_ih_f": u(k[0], (4 * hidden_size, input_size)),
        "w_hh_f": u(k[1], (4 * hidden_size, hidden_size)),
        "b_ih_f": u(k[2], (4 * hidden_size,)),
        "b_hh_f": u(k[3], (4 * hidden_size,)),
        "w_ih_b": u(k[4], (4 * hidden_size, input_size)),
        "w_hh_b": u(k[5], (4 * hidden_size, hidden_size)),
        "b_ih_b": u(k[6], (4 * hidden_size,)),
        "b_hh_b": u(k[7], (4 * hidden_size,)),
        "w_lin": u(k[8], (output_size, 2 * hidden_size)),
        "b_lin": u(k[9], (output_size,)),
    }


if __name__ == "__main__":
    B, T = 2, 8
    input_size, hidden_size, output_size = 16, 32, 16

    key = jax.random.PRNGKey(0)
    key_x, key_p = jax.random.split(key)
    x = jax.random.normal(key_x, (B, T, input_size), dtype=jnp.float32)
    params = init_params(key_p, input_size, hidden_size, output_size)

    out = bidirectional_lstm_forward(x, params)
    out = jax.block_until_ready(out)
    assert out.shape == (B, T, output_size), out.shape
    assert bool(jnp.all(jnp.isfinite(out)))

    ref = _reference_forward(x, params)
    max_err = float(jnp.max(jnp.abs(out - ref)))
    assert jnp.allclose(out, ref, atol=2e-3, rtol=2e-3), max_err

    print("KERNEL_OK")
</pallas_src>

<mosaic_0001>
module attributes {stable_mosaic.version = 11 : i64} {
  func.func @_linear_kernel(%arg0: i32, %arg1: memref<64x32xf32, #tpu.memory_space<vmem>>, %arg2: memref<64x32xf32, #tpu.memory_space<vmem>>, %arg3: memref<32x16xbf16, #tpu.memory_space<vmem>>, %arg4: memref<32x16xbf16, #tpu.memory_space<vmem>>, %arg5: memref<1x16xf32, #tpu.memory_space<vmem>>, %arg6: memref<64x16xf32, #tpu.memory_space<vmem>>) attributes {dimension_semantics = [#tpu.dimension_semantics<parallel>], iteration_bounds = array<i64: 1>, scalar_prefetch = 0 : i64, scratch_operands = 0 : i64, tpu.core_type = #tpu.core_type<tc>, window_params = [{transform_indices = @transform_0, window_bounds = array<i64: 64, 32>}, {transform_indices = @transform_1, window_bounds = array<i64: 64, 32>}, {pipeline_mode = #tpu.pipeline_mode<synchronous>, transform_indices = @transform_2, window_bounds = array<i64: 32, 16>}, {pipeline_mode = #tpu.pipeline_mode<synchronous>, transform_indices = @transform_3, window_bounds = array<i64: 32, 16>}, {pipeline_mode = #tpu.pipeline_mode<synchronous>, transform_indices = @transform_4, window_bounds = array<i64: 1, 16>}, {transform_indices = @transform_5, window_bounds = array<i64: 64, 16>}]} {
    %c0 = arith.constant 0 : index
    %c0_0 = arith.constant 0 : index
    %0 = vector.load %arg1[%c0, %c0_0] : memref<64x32xf32, #tpu.memory_space<vmem>>, vector<64x32xf32>
    %1 = arith.truncf %0 : vector<64x32xf32> to vector<64x32xbf16>
    %c0_1 = arith.constant 0 : index
    %c0_2 = arith.constant 0 : index
    %2 = vector.load %arg3[%c0_1, %c0_2] : memref<32x16xbf16, #tpu.memory_space<vmem>>, vector<32x16xbf16>
    %cst = arith.constant dense<0.000000e+00> : vector<64x16xf32>
    %3 = tpu.matmul %1, %2, %cst {dimension_numbers = #tpu.dot_dimension_numbers<[1], [0], [0], [1], [0, 0, 1, 1], [], []>} : vector<64x32xbf16>, vector<32x16xbf16>, vector<64x16xf32> -> vector<64x16xf32>
    %c0_3 = arith.constant 0 : index
    %c0_4 = arith.constant 0 : index
    %4 = vector.load %arg2[%c0_3, %c0_4] : memref<64x32xf32, #tpu.memory_space<vmem>>, vector<64x32xf32>
    %5 = arith.truncf %4 : vector<64x32xf32> to vector<64x32xbf16>
    %c0_5 = arith.constant 0 : index
    %c0_6 = arith.constant 0 : index
    %6 = vector.load %arg4[%c0_5, %c0_6] : memref<32x16xbf16, #tpu.memory_space<vmem>>, vector<32x16xbf16>
    %cst_7 = arith.constant dense<0.000000e+00> : vector<64x16xf32>
    %7 = tpu.matmul %5, %6, %cst_7 {dimension_numbers = #tpu.dot_dimension_numbers<[1], [0], [0], [1], [0, 0, 1, 1], [], []>} : vector<64x32xbf16>, vector<32x16xbf16>, vector<64x16xf32> -> vector<64x16xf32>
    %8 = arith.addf %3, %7 : vector<64x16xf32>
    %c0_8 = arith.constant 0 : index
    %c0_9 = arith.constant 0 : index
    %9 = vector.load %arg5[%c0_8, %c0_9] : memref<1x16xf32, #tpu.memory_space<vmem>>, vector<1x16xf32>
    %10 = vector.broadcast %9 : vector<1x16xf32> to vector<64x16xf32>
    %11 = arith.addf %8, %10 : vector<64x16xf32>
    %c0_10 = arith.constant 0 : index
    %c0_11 = arith.constant 0 : index
    %12 = vector.load %arg6[%c0_10, %c0_11] : memref<64x16xf32, #tpu.memory_space<vmem>>, vector<64x16xf32>
    tpu.vector_store %arg6[%c0_10, %c0_11], %11 {strides = array<i32>} : memref<64x16xf32, #tpu.memory_space<vmem>>, vector<64x16xf32>,
    return
  }
  func.func @transform_0(%arg0: i32) -> (i32, i32) {
    %c0_i32 = arith.constant 0 : i32
    %c0_i32_0 = arith.constant 0 : i32
    return %arg0, %c0_i32 : i32, i32
  }
  func.func @transform_1(%arg0: i32) -> (i32, i32) {
    %c0_i32 = arith.constant 0 : i32
    %c0_i32_0 = arith.constant 0 : i32
    return %arg0, %c0_i32 : i32, i32
  }
  func.func @transform_2(%arg0: i32) -> (i32, i32) {
    %c0_i32 = arith.constant 0 : i32
    %c0_i32_0 = arith.constant 0 : i32
    %c0_i32_1 = arith.constant 0 : i32
    return %c0_i32, %c0_i32_0 : i32, i32
  }
  func.func @transform_3(%arg0: i32) -> (i32, i32) {
    %c0_i32 = arith.constant 0 : i32
    %c0_i32_0 = arith.constant 0 : i32
    %c0_i32_1 = arith.constant 0 : i32
    return %c0_i32, %c0_i32_0 : i32, i32
  }
  func.func @transform_4(%arg0: i32) -> (i32, i32) {
    %c0_i32 = arith.constant 0 : i32
    %c0_i32_0 = arith.constant 0 : i32
    %c0_i32_1 = arith.constant 0 : i32
    return %c0_i32, %c0_i32_0 : i32, i32
  }
  func.func @transform_5(%arg0: i32) -> (i32, i32) {
    %c0_i32 = arith.constant 0 : i32
    %c0_i32_0 = arith.constant 0 : i32
    return %arg0, %c0_i32 : i32, i32
  }
}

module attributes {stable_mosaic.version = 11 : i64} {
  func.func @_bilstm_kernel(%arg0: i32, %arg1: memref<64x16xbf16, #tpu.memory_space<vmem>>, %arg2: memref<64x16xbf16, #tpu.memory_space<vmem>>, %arg3: memref<16x128xbf16, #tpu.memory_space<vmem>>, %arg4: memref<16x128xbf16, #tpu.memory_space<vmem>>, %arg5: memref<1x128xf32, #tpu.memory_space<vmem>>, %arg6: memref<1x128xf32, #tpu.memory_space<vmem>>, %arg7: memref<64x256xbf16, #tpu.memory_space<vmem>>, %arg8: memref<64x32xf32, #tpu.memory_space<vmem>>, %arg9: memref<64x32xf32, #tpu.memory_space<vmem>>, %arg10: memref<64x128xf32, #tpu.memory_space<vmem>>, %arg11: memref<64x128xf32, #tpu.memory_space<vmem>>, %arg12: memref<8x64xf32, #tpu.memory_space<vmem>>, %arg13: memref<8x32xf32, #tpu.memory_space<vmem>>, %arg14: memref<8x32xf32, #tpu.memory_space<vmem>>) attributes {dimension_semantics = [#tpu.dimension_semantics<arbitrary>], iteration_bounds = array<i64: 1>, scalar_prefetch = 0 : i64, scratch_operands = 5 : i64, tpu.core_type = #tpu.core_type<tc>, window_params = [{transform_indices = @transform_0, window_bounds = array<i64: 64, 16>}, {transform_indices = @transform_1, window_bounds = array<i64: 64, 16>}, {pipeline_mode = #tpu.pipeline_mode<synchronous>, transform_indices = @transform_2, window_bounds = array<i64: 16, 128>}, {pipeline_mode = #tpu.pipeline_mode<synchronous>, transform_indices = @transform_3, window_bounds = array<i64: 16, 128>}, {pipeline_mode = #tpu.pipeline_mode<synchronous>, transform_indices = @transform_4, window_bounds = array<i64: 1, 128>}, {pipeline_mode = #tpu.pipeline_mode<synchronous>, transform_indices = @transform_5, window_bounds = array<i64: 1, 128>}, {pipeline_mode = #tpu.pipeline_mode<synchronous>, transform_indices = @transform_6, window_bounds = array<i64: 64, 256>}, {transform_indices = @transform_7, window_bounds = array<i64: 64, 32>}, {transform_indices = @transform_8, window_bounds = array<i64: 64, 32>}]} {
    %c0_i32 = arith.constant 0 : i32
    %0 = arith.cmpi eq, %arg0, %c0_i32 : i32
    %1 = arith.extui %0 : i1 to i32
    %c0_i32_0 = arith.constant 0 : i32
    %2 = arith.cmpi ne, %1, %c0_i32_0 : i32
    scf.if %2 {
      %cst_21 = arith.constant 0.000000e+00 : f32
      %19 = vector.broadcast %cst_21 : f32 to vector<8x64xf32>
      %c0_22 = arith.constant 0 : index
      %c0_23 = arith.constant 0 : index
      %20 = vector.load %arg12[%c0_22, %c0_23] : memref<8x64xf32, #tpu.memory_space<vmem>>, vector<8x64xf32>
      tpu.vector_store %arg12[%c0_22, %c0_23], %19 {strides = array<i32>} : memref<8x64xf32, #tpu.memory_space<vmem>>, vector<8x64xf32>,
      %cst_24 = arith.constant 0.000000e+00 : f32
      %21 = vector.broadcast %cst_24 : f32 to vector<8x32xf32>
      %c0_25 = arith.constant 0 : index
      %c0_26 = arith.constant 0 : index
      %22 = vector.load %arg13[%c0_25, %c0_26] : memref<8x32xf32, #tpu.memory_space<vmem>>, vector<8x32xf32>
      tpu.vector_store %arg13[%c0_25, %c0_26], %21 {strides = array<i32>} : memref<8x32xf32, #tpu.memory_space<vmem>>, vector<8x32xf32>,
      %cst_27 = arith.constant 0.000000e+00 : f32
      %23 = vector.broadcast %cst_27 : f32 to vector<8x32xf32>
      %c0_28 = arith.constant 0 : index
      %c0_29 = arith.constant 0 : index
      %24 = vector.load %arg14[%c0_28, %c0_29] : memref<8x32xf32, #tpu.memory_space<vmem>>, vector<8x32xf32>
      tpu.vector_store %arg14[%c0_28, %c0_29], %23 {strides = array<i32>} : memref<8x32xf32, #tpu.memory_space<vmem>>, vector<8x32xf32>,
    } else {
    }
    %c0 = arith.constant 0 : index
    %c0_1 = arith.constant 0 : index
    %3 = vector.load %arg1[%c0, %c0_1] : memref<64x16xbf16, #tpu.memory_space<vmem>>, vector<64x16xbf16>
    %c0_2 = arith.constant 0 : index
    %c0_3 = arith.constant 0 : index
    %4 = vector.load %arg3[%c0_2, %c0_3] : memref<16x128xbf16, #tpu.memory_space<vmem>>, vector<16x128xbf16>
    %cst = arith.constant dense<0.000000e+00> : vector<64x128xf32>
    %5 = tpu.matmul %3, %4, %cst {dimension_numbers = #tpu.dot_dimension_numbers<[1], [0], [0], [1], [0, 0, 1, 1], [], []>} : vector<64x16xbf16>, vector<16x128xbf16>, vector<64x128xf32> -> vector<64x128xf32>
    %c0_4 = arith.constant 0 : index
    %c0_5 = arith.constant 0 : index
    %6 = vector.load %arg5[%c0_4, %c0_5] : memref<1x128xf32, #tpu.memory_space<vmem>>, vector<1x128xf32>
    %7 = vector.broadcast %6 : vector<1x128xf32> to vector<64x128xf32>
    %8 = arith.addf %5, %7 : vector<64x128xf32>
    %c0_6 = arith.constant 0 : index
    %c0_7 = arith.constant 0 : index
    %9 = vector.load %arg10[%c0_6, %c0_7] : memref<64x128xf32, #tpu.memory_space<vmem>>, vector<64x128xf32>
    tpu.vector_store %arg10[%c0_6, %c0_7], %8 {strides = array<i32>} : memref<64x128xf32, #tpu.memory_space<vmem>>, vector<64x128xf32>,
    %c0_8 = arith.constant 0 : index
    %c0_9 = arith.constant 0 : index
    %10 = vector.load %arg2[%c0_8, %c0_9] : memref<64x16xbf16, #tpu.memory_space<vmem>>, vector<64x16xbf16>
    %c0_10 = arith.constant 0 : index
    %c0_11 = arith.constant 0 : index
    %11 = vector.load %arg4[%c0_10, %c0_11] : memref<16x128xbf16, #tpu.memory_space<vmem>>, vector<16x128xbf16>
    %cst_12 = arith.constant dense<0.000000e+00> : vector<64x128xf32>
    %12 = tpu.matmul %10, %11, %cst_12 {dimension_numbers = #tpu.dot_dimension_numbers<[1], [0], [0], [1], [0, 0, 1, 1], [], []>} : vector<64x16xbf16>, vector<16x128xbf16>, vector<64x128xf32> -> vector<64x128xf32>
    %c0_13 = arith.constant 0 : index
    %c0_14 = arith.constant 0 : index
    %13 = vector.load %arg6[%c0_13, %c0_14] : memref<1x128xf32, #tpu.memory_space<vmem>>, vector<1x128xf32>
    %14 = vector.broadcast %13 : vector<1x128xf32> to vector<64x128xf32>
    %15 = arith.addf %12, %14 : vector<64x128xf32>
    %c0_15 = arith.constant 0 : index
    %c0_16 = arith.constant 0 : index
    %16 = vector.load %arg11[%c0_15, %c0_16] : memref<64x128xf32, #tpu.memory_space<vmem>>, vector<64x128xf32>
    tpu.vector_store %arg11[%c0_15, %c0_16], %15 {strides = array<i32>} : memref<64x128xf32, #tpu.memory_space<vmem>>, vector<64x128xf32>,
    %c0_17 = arith.constant 0 : index
    %c0_18 = arith.constant 0 : index
    %17 = vector.load %arg7[%c0_17, %c0_18] : memref<64x256xbf16, #tpu.memory_space<vmem>>, vector<64x256xbf16>
    %c0_i32_19 = arith.constant 0 : i32
    %c2_i32 = arith.constant 2 : i32
    %18 = arith.addi %c0_i32_19, %c2_i32 : i32
    %c1_i32 = arith.constant 1 : i32
    scf.for %arg15 = %c0_i32_19 to %18 step %c1_i32  : i32 {
      %c4_i32 = arith.constant 4 : i32
      %19 = arith.muli %arg15, %c4_i32 : i32
      %c0_i32_21 = arith.constant 0 : i32
      %20 = arith.addi %19, %c0_i32_21 : i32
      %c8_i32 = arith.constant 8 : i32
      %21 = arith.muli %20, %c8_i32 : i32
      %22 = tpu.assume_multiple %21, 8 : i32
      %c7_i32 = arith.constant 7 : i32
      %23 = arith.subi %c7_i32, %20 : i32
      %c8_i32_22 = arith.constant 8 : i32
      %24 = arith.muli %23, %c8_i32_22 : i32
      %25 = tpu.assume_multiple %24, 8 : i32
      %c0_23 = arith.constant 0 : index
      %c0_24 = arith.constant 0 : index
      %26 = vector.load %arg12[%c0_23, %c0_24] : memref<8x64xf32, #tpu.memory_space<vmem>>, vector<8x64xf32>
      %27 = arith.truncf %26 : vector<8x64xf32> to vector<8x64xbf16>
      %cst_25 = arith.constant dense<0.000000e+00> : vector<8x256xf32>
      %28 = tpu.matmul %27, %17, %cst_25 {dimension_numbers = #tpu.dot_dimension_numbers<[1], [0], [0], [1], [0, 0, 1, 1], [], []>} : vector<8x64xbf16>, vector<64x256xbf16>, vector<8x256xf32> -> vector<8x256xf32>
      %29 = arith.index_cast %22 : i32 to index
      %c0_26 = arith.constant 0 : index
      %30 = vector.load %arg10[%29, %c0_26] : memref<64x128xf32, #tpu.memory_space<vmem>>, vector<8x128xf32>
      %31 = vector.extract_strided_slice %28 {offsets = [0, 0], sizes = [8, 128], strides = [1, 1]} : vector<8x256xf32> to vector<8x128xf32>
      %32 = arith.addf %30, %31 : vector<8x128xf32>
      %33 = arith.index_cast %25 : i32 to index
      %c0_27 = arith.constant 0 : index
      %34 = vector.load %arg11[%33, %c0_27] : memref<64x128xf32, #tpu.memory_space<vmem>>, vector<8x128xf32>
      %35 = vector.extract_strided_slice %28 {offsets = [0, 128], sizes = [8, 128], strides = [1, 1]} : vector<8x256xf32> to vector<8x128xf32>
      %36 = arith.addf %34, %35 : vector<8x128xf32>
      %37 = arith.negf %32 : vector<8x128xf32>
      %38 = math.exp %37 : vector<8x128xf32>
      %cst_28 = arith.constant 1.000000e+00 : f32
      %39 = vector.broadcast %cst_28 : f32 to vector<8x128xf32>
      %40 = arith.addf %39, %38 : vector<8x128xf32>
      %41 = arith.divf %39, %40 : vector<8x128xf32>
      %42 = arith.negf %36 : vector<8x128xf32>
      %43 = math.exp %42 : vector<8x128xf32>
      %cst_29 = arith.constant 1.000000e+00 : f32
      %44 = vector.broadcast %cst_29 : f32 to vector<8x128xf32>
      %45 = arith.addf %44, %43 : vector<8x128xf32>
      %46 = arith.divf %44, %45 : vector<8x128xf32>
      %47 = vector.extract_strided_slice %41 {offsets = [0, 0], sizes = [8, 32], strides = [1, 1]} : vector<8x128xf32> to vector<8x32xf32>
      %48 = vector.extract_strided_slice %41 {offsets = [0, 32], sizes = [8, 32], strides = [1, 1]} : vector<8x128xf32> to vector<8x32xf32>
      %49 = vector.extract_strided_slice %41 {offsets = [0, 64], sizes = [8, 32], strides = [1, 1]} : vector<8x128xf32> to vector<8x32xf32>
      %cst_30 = arith.constant 2.000000e+00 : f32
      %50 = vector.broadcast %cst_30 : f32 to vector<8x32xf32>
      %51 = arith.mulf %50, %49 : vector<8x32xf32>
      %cst_31 = arith.constant 1.000000e+00 : f32
      %52 = vector.broadcast %cst_31 : f32 to vector<8x32xf32>
      %53 = arith.subf %51, %52 : vector<8x32xf32>
      %54 = vector.extract_strided_slice %41 {offsets = [0, 96], sizes = [8, 32], strides = [1, 1]} : vector<8x128xf32> to vector<8x32xf32>
      %55 = vector.extract_strided_slice %46 {offsets = [0, 0], sizes = [8, 32], strides = [1, 1]} : vector<8x128xf32> to vector<8x32xf32>
      %56 = vector.extract_strided_slice %46 {offsets = [0, 32], sizes = [8, 32], strides = [1, 1]} : vector<8x128xf32> to vector<8x32xf32>
      %57 = vector.extract_strided_slice %46 {offsets = [0, 64], sizes = [8, 32], strides = [1, 1]} : vector<8x128xf32> to vector<8x32xf32>
      %cst_32 = arith.constant 2.000000e+00 : f32
      %58 = vector.broadcast %cst_32 : f32 to vector<8x32xf32>
      %59 = arith.mulf %58, %57 : vector<8x32xf32>
      %cst_33 = arith.constant 1.000000e+00 : f32
      %60 = vector.broadcast %cst_33 : f32 to vector<8x32xf32>
      %61 = arith.subf %59, %60 : vector<8x32xf32>
      %62 = vector.extract_strided_slice %46 {offsets = [0, 96], sizes = [8, 32], strides = [1, 1]} : vector<8x128xf32> to vector<8x32xf32>
      %c0_34 = arith.constant 0 : index
      %c0_35 = arith.constant 0 : index
      %63 = vector.load %arg13[%c0_34, %c0_35] : memref<8x32xf32, #tpu.memory_space<vmem>>, vector<8x32xf32>
      %64 = arith.mulf %48, %63 : vector<8x32xf32>
      %65 = arith.mulf %47, %53 : vector<8x32xf32>
      %66 = arith.addf %64, %65 : vector<8x32xf32>
      %c0_36 = arith.constant 0 : index
      %c0_37 = arith.constant 0 : index
      %67 = vector.load %arg14[%c0_36, %c0_37] : memref<8x32xf32, #tpu.memory_space<vmem>>, vector<8x32xf32>
      %68 = arith.mulf %56, %67 : vector<8x32xf32>
      %69 = arith.mulf %55, %61 : vector<8x32xf32>
      %70 = arith.addf %68, %69 : vector<8x32xf32>
      %71 = math.tanh %66 : vector<8x32xf32>
      %72 = arith.mulf %54, %71 : vector<8x32xf32>
      %73 = math.tanh %70 : vector<8x32xf32>
      %74 = arith.mulf %62, %73 : vector<8x32xf32>
      %c0_38 = arith.constant 0 : index
      %c0_39 = arith.constant 0 : index
      %75 = vector.load %arg13[%c0_38, %c0_39] : memref<8x32xf32, #tpu.memory_space<vmem>>, vector<8x32xf32>
      tpu.vector_store %arg13[%c0_38, %c0_39], %66 {strides = array<i32>} : memref<8x32xf32, #tpu.memory_space<vmem>>, vector<8x32xf32>,
      %c0_40 = arith.constant 0 : index
      %c0_41 = arith.constant 0 : index
      %76 = vector.load %arg14[%c0_40, %c0_41] : memref<8x32xf32, #tpu.memory_space<vmem>>, vector<8x32xf32>
      tpu.vector_store %arg14[%c0_40, %c0_41], %70 {strides = array<i32>} : memref<8x32xf32, #tpu.memory_space<vmem>>, vector<8x32xf32>,
      %c0_42 = arith.constant 0 : index
      %c0_43 = arith.constant 0 : index
      %77 = vector.load %arg12[%c0_42, %c0_43] : memref<8x64xf32, #tpu.memory_space<vmem>>, vector<8x32xf32>
      tpu.vector_store %arg12[%c0_42, %c0_43], %72 {strides = array<i32>} : memref<8x64xf32, #tpu.memory_space<vmem>>, vector<8x32xf32>,
      %c0_44 = arith.constant 0 : index
      %c32 = arith.constant 32 : index
      %78 = vector.load %arg12[%c0_44, %c32] : memref<8x64xf32, #tpu.memory_space<vmem>>, vector<8x32xf32>
      tpu.vector_store %arg12[%c0_44, %c32], %74 {strides = array<i32>} : memref<8x64xf32, #tpu.memory_space<vmem>>, vector<8x32xf32>,
      %79 = arith.index_cast %22 : i32 to index
      %c0_45 = arith.constant 0 : index
      %80 = vector.load %arg8[%79, %c0_45] : memref<64x32xf32, #tpu.memory_space<vmem>>, vector<8x32xf32>
      tpu.vector_store %arg8[%79, %c0_45], %72 {strides = array<i32>} : memref<64x32xf32, #tpu.memory_space<vmem>>, vector<8x32xf32>,
      %81 = arith.index_cast %25 : i32 to index
      %c0_46 = arith.constant 0 : index
      %82 = vector.load %arg9[%81, %c0_46] : memref<64x32xf32, #tpu.memory_space<vmem>>, vector<8x32xf32>
      tpu.vector_store %arg9[%81, %c0_46], %74 {strides = array<i32>} : memref<64x32xf32, #tpu.memory_space<vmem>>, vector<8x32xf32>,
      %c4_i32_47 = arith.constant 4 : i32
      %83 = arith.muli %arg15, %c4_i32_47 : i32
      %c1_i32_48 = arith.constant 1 : i32
      %84 = arith.addi %83, %c1_i32_48 : i32
      %c8_i32_49 = arith.constant 8 : i32
      %85 = arith.muli %84, %c8_i32_49 : i32
      %86 = tpu.assume_multiple %85, 8 : i32
      %c7_i32_50 = arith.constant 7 : i32
      %87 = arith.subi %c7_i32_50, %84 : i32
      %c8_i32_51 = arith.constant 8 : i32
      %88 = arith.muli %87, %c8_i32_51 : i32
      %89 = tpu.assume_multiple %88, 8 : i32
      %c0_52 = arith.constant 0 : index
      %c0_53 = arith.constant 0 : index
      %90 = vector.load %arg12[%c0_52, %c0_53] : memref<8x64xf32, #tpu.memory_space<vmem>>, vector<8x64xf32>
      %91 = arith.truncf %90 : vector<8x64xf32> to vector<8x64xbf16>
      %cst_54 = arith.constant dense<0.000000e+00> : vector<8x256xf32>
      %92 = tpu.matmul %91, %17, %cst_54 {dimension_numbers = #tpu.dot_dimension_numbers<[1], [0], [0], [1], [0, 0, 1, 1], [], []>} : vector<8x64xbf16>, vector<64x256xbf16>, vector<8x256xf32> -> vector<8x256xf32>
      %93 = arith.index_cast %86 : i32 to index
      %c0_55 = arith.constant 0 : index
      %94 = vector.load %arg10[%93, %c0_55] : memref<64x128xf32, #tpu.memory_space<vmem>>, vector<8x128xf32>
      %95 = vector.extract_strided_slice %92 {offsets = [0, 0], sizes = [8, 128], strides = [1, 1]} : vector<8x256xf32> to vector<8x128xf32>
      %96 = arith.addf %94, %95 : vector<8x128xf32>
      %97 = arith.index_cast %89 : i32 to index
      %c0_56 = arith.constant 0 : index
      %98 = vector.load %arg11[%97, %c0_56] : memref<64x128xf32, #tpu.memory_space<vmem>>, vector<8x128xf32>
      %99 = vector.extract_strided_slice %92 {offsets = [0, 128], sizes = [8, 128], strides = [1, 1]} : vector<8x256xf32> to vector<8x128xf32>
      %100 = arith.addf %98, %99 : vector<8x128xf32>
      %101 = arith.negf %96 : vector<8x128xf32>
      %102 = math.exp %101 : vector<8x128xf32>
      %cst_57 = arith.constant 1.000000e+00 : f32
      %103 = vector.broadcast %cst_57 : f32 to vector<8x128xf32>
      %104 = arith.addf %103, %102 : vector<8x128xf32>
      %105 = arith.divf %103, %104 : vector<8x128xf32>
      %106 = arith.negf %100 : vector<8x128xf32>
      %107 = math.exp %106 : vector<8x128xf32>
      %cst_58 = arith.constant 1.000000e+00 : f32
      %108 = vector.broadcast %cst_58 : f32 to vector<8x128xf32>
      %109 = arith.addf %108, %107 : vector<8x128xf32>
      %110 = arith.divf %108, %109 : vector<8x128xf32>
      %111 = vector.extract_strided_slice %105 {offsets = [0, 0], sizes = [8, 32], strides = [1, 1]} : vector<8x128xf32> to vector<8x32xf32>
      %112 = vector.extract_strided_slice %105 {offsets = [0, 32], sizes = [8, 32], strides = [1, 1]} : vector<8x128xf32> to vector<8x32xf32>
      %113 = vector.extract_strided_slice %105 {offsets = [0, 64], sizes = [8, 32], strides = [1, 1]} : vector<8x128xf32> to vector<8x32xf32>
      %cst_59 = arith.constant 2.000000e+00 : f32
      %114 = vector.broadcast %cst_59 : f32 to vector<8x32xf32>
      %115 = arith.mulf %114, %113 : vector<8x32xf32>
      %cst_60 = arith.constant 1.000000e+00 : f32
      %116 = vector.broadcast %cst_60 : f32 to vector<8x32xf32>
      %117 = arith.subf %115, %116 : vector<8x32xf32>
      %118 = vector.extract_strided_slice %105 {offsets = [0, 96], sizes = [8, 32], strides = [1, 1]} : vector<8x128xf32> to vector<8x32xf32>
      %119 = vector.extract_strided_slice %110 {offsets = [0, 0], sizes = [8, 32], strides = [1, 1]} : vector<8x128xf32> to vector<8x32xf32>
      %120 = vector.extract_strided_slice %110 {offsets = [0, 32], sizes = [8, 32], strides = [1, 1]} : vector<8x128xf32> to vector<8x32xf32>
      %121 = vector.extract_strided_slice %110 {offsets = [0, 64], sizes = [8, 32], strides = [1, 1]} : vector<8x128xf32> to vector<8x32xf32>
      %cst_61 = arith.constant 2.000000e+00 : f32
      %122 = vector.broadcast %cst_61 : f32 to vector<8x32xf32>
      %123 = arith.mulf %122, %121 : vector<8x32xf32>
      %cst_62 = arith.constant 1.000000e+00 : f32
      %124 = vector.broadcast %cst_62 : f32 to vector<8x32xf32>
      %125 = arith.subf %123, %124 : vector<8x32xf32>
      %126 = vector.extract_strided_slice %110 {offsets = [0, 96], sizes = [8, 32], strides = [1, 1]} : vector<8x128xf32> to vector<8x32xf32>
      %c0_63 = arith.constant 0 : index
      %c0_64 = arith.constant 0 : index
      %127 = vector.load %arg13[%c0_63, %c0_64] : memref<8x32xf32, #tpu.memory_space<vmem>>, vector<8x32xf32>
      %128 = arith.mulf %112, %127 : vector<8x32xf32>
      %129 = arith.mulf %111, %117 : vector<8x32xf32>
      %130 = arith.addf %128, %129 : vector<8x32xf32>
      %c0_65 = arith.constant 0 : index
      %c0_66 = arith.constant 0 : index
      %131 = vector.load %arg14[%c0_65, %c0_66] : memref<8x32xf32, #tpu.memory_space<vmem>>, vector<8x32xf32>
      %132 = arith.mulf %120, %131 : vector<8x32xf32>
      %133 = arith.mulf %119, %125 : vector<8x32xf32>
      %134 = arith.addf %132, %133 : vector<8x32xf32>
      %135 = math.tanh %130 : vector<8x32xf32>
      %136 = arith.mulf %118, %135 : vector<8x32xf32>
      %137 = math.tanh %134 : vector<8x32xf32>
      %138 = arith.mulf %126, %137 : vector<8x32xf32>
      %c0_67 = arith.constant 0 : index
      %c0_68 = arith.constant 0 : index
      %139 = vector.load %arg13[%c0_67, %c0_68] : memref<8x32xf32, #tpu.memory_space<vmem>>, vector<8x32xf32>
      tpu.vector_store %arg13[%c0_67, %c0_68], %130 {strides = array<i32>} : memref<8x32xf32, #tpu.memory_space<vmem>>, vector<8x32xf32>,
      %c0_69 = arith.constant 0 : index
      %c0_70 = arith.constant 0 : index
      %140 = vector.load %arg14[%c0_69, %c0_70] : memref<8x32xf32, #tpu.memory_space<vmem>>, vector<8x32xf32>
      tpu.vector_store %arg14[%c0_69, %c0_70], %134 {strides = array<i32>} : memref<8x32xf32, #tpu.memory_space<vmem>>, vector<8x32xf32>,
      %c0_71 = arith.constant 0 : index
      %c0_72 = arith.constant 0 : index
      %141 = vector.load %arg12[%c0_71, %c0_72] : memref<8x64xf32, #tpu.memory_space<vmem>>, vector<8x32xf32>
      tpu.vector_store %arg12[%c0_71, %c0_72], %136 {strides = array<i32>} : memref<8x64xf32, #tpu.memory_space<vmem>>, vector<8x32xf32>,
      %c0_73 = arith.constant 0 : index
      %c32_74 = arith.constant 32 : index
      %142 = vector.load %arg12[%c0_73, %c32_74] : memref<8x64xf32, #tpu.memory_space<vmem>>, vector<8x32xf32>
      tpu.vector_store %arg12[%c0_73, %c32_74], %138 {strides = array<i32>} : memref<8x64xf32, #tpu.memory_space<vmem>>, vector<8x32xf32>,
      %143 = arith.index_cast %86 : i32 to index
      %c0_75 = arith.constant 0 : index
      %144 = vector.load %arg8[%143, %c0_75] : memref<64x32xf32, #tpu.memory_space<vmem>>, vector<8x32xf32>
      tpu.vector_store %arg8[%143, %c0_75], %136 {strides = array<i32>} : memref<64x32xf32, #tpu.memory_space<vmem>>, vector<8x32xf32>,
      %145 = arith.index_cast %89 : i32 to index
      %c0_76 = arith.constant 0 : index
      %146 = vector.load %arg9[%145, %c0_76] : memref<64x32xf32, #tpu.memory_space<vmem>>, vector<8x32xf32>
      tpu.vector_store %arg9[%145, %c0_76], %138 {strides = array<i32>} : memref<64x32xf32, #tpu.memory_space<vmem>>, vector<8x32xf32>,
      %c4_i32_77 = arith.constant 4 : i32
      %147 = arith.muli %arg15, %c4_i32_77 : i32
      %c2_i32_78 = arith.constant 2 : i32
      %148 = arith.addi %147, %c2_i32_78 : i32
      %c8_i32_79 = arith.constant 8 : i32
      %149 = arith.muli %148, %c8_i32_79 : i32
      %150 = tpu.assume_multiple %149, 8 : i32
      %c7_i32_80 = arith.constant 7 : i32
      %151 = arith.subi %c7_i32_80, %148 : i32
      %c8_i32_81 = arith.constant 8 : i32
      %152 = arith.muli %151, %c8_i32_81 : i32
      %153 = tpu.assume_multiple %152, 8 : i32
      %c0_82 = arith.constant 0 : index
      %c0_83 = arith.constant 0 : index
      %154 = vector.load %arg12[%c0_82, %c0_83] : memref<8x64xf32, #tpu.memory_space<vmem>>, vector<8x64xf32>
      %155 = arith.truncf %154 : vector<8x64xf32> to vector<8x64xbf16>
      %cst_84 = arith.constant dense<0.000000e+00> : vector<8x256xf32>
      %156 = tpu.matmul %155, %17, %cst_84 {dimension_numbers = #tpu.dot_dimension_numbers<[1], [0], [0], [1], [0, 0, 1, 1], [], []>} : vector<8x64xbf16>, vector<64x256xbf16>, vector<8x256xf32> -> vector<8x256xf32>
      %157 = arith.index_cast %150 : i32 to index
      %c0_85 = arith.constant 0 : index
      %158 = vector.load %arg10[%157, %c0_85] : memref<64x128xf32, #tpu.memory_space<vmem>>, vector<8x128xf32>
      %159 = vector.extract_strided_slice %156 {offsets = [0, 0], sizes = [8, 128], strides = [1, 1]} : vector<8x256xf32> to vector<8x128xf32>
      %160 = arith.addf %158, %159 : vector<8x128xf32>
      %161 = arith.index_cast %153 : i32 to index
      %c0_86 = arith.constant 0 : index
      %162 = vector.load %arg11[%161, %c0_86] : memref<64x128xf32, #tpu.memory_space<vmem>>, vector<8x128xf32>
      %163 = vector.extract_strided_slice %156 {offsets = [0, 128], sizes = [8, 128], strides = [1, 1]} : vector<8x256xf32> to vector<8x128xf32>
      %164 = arith.addf %162, %163 : vector<8x128xf32>
      %165 = arith.negf %160 : vector<8x128xf32>
      %166 = math.exp %165 : vector<8x128xf32>
      %cst_87 = arith.constant 1.000000e+00 : f32
      %167 = vector.broadcast %cst_87 : f32 to vector<8x128xf32>
      %168 = arith.addf %167, %166 : vector<8x128xf32>
      %169 = arith.divf %167, %168 : vector<8x128xf32>
      %170 = arith.negf %164 : vector<8x128xf32>
      %171 = math.exp %170 : vector<8x128xf32>
      %cst_88 = arith.constant 1.000000e+00 : f32
      %172 = vector.broadcast %cst_88 : f32 to vector<8x128xf32>
      %173 = arith.addf %172, %171 : vector<8x128xf32>
      %174 = arith.divf %172, %173 : vector<8x128xf32>
      %175 = vector.extract_strided_slice %169 {offsets = [0, 0], sizes = [8, 32], strides = [1, 1]} : vector<8x128xf32> to vector<8x32xf32>
      %176 = vector.extract_strided_slice %169 {offsets = [0, 32], sizes = [8, 32], strides = [1, 1]} : vector<8x128xf32> to vector<8x32xf32>
      %177 = vector.extract_strided_slice %169 {offsets = [0, 64], sizes = [8, 32], strides = [1, 1]} : vector<8x128xf32> to vector<8x32xf32>
      %cst_89 = arith.constant 2.000000e+00 : f32
      %178 = vector.broadcast %cst_89 : f32 to vector<8x32xf32>
      %179 = arith.mulf %178, %177 : vector<8x32xf32>
      %cst_90 = arith.constant 1.000000e+00 : f32
      %180 = vector.broadcast %cst_90 : f32 to vector<8x32xf32>
      %181 = arith.subf %179, %180 : vector<8x32xf32>
      %182 = vector.extract_strided_slice %169 {offsets = [0, 96], sizes = [8, 32], strides = [1, 1]} : vector<8x128xf32> to vector<8x32xf32>
      %183 = vector.extract_strided_slice %174 {offsets = [0, 0], sizes = [8, 32], strides = [1, 1]} : vector<8x128xf32> to vector<8x32xf32>
      %184 = vector.extract_strided_slice %174 {offsets = [0, 32], sizes = [8, 32], strides = [1, 1]} : vector<8x128xf32> to vector<8x32xf32>
      %185 = vector.extract_strided_slice %174 {offsets = [0, 64], sizes = [8, 32], strides = [1, 1]} : vector<8x128xf32> to vector<8x32xf32>
      %cst_91 = arith.constant 2.000000e+00 : f32
      %186 = vector.broadcast %cst_91 : f32 to vector<8x32xf32>
      %187 = arith.mulf %186, %185 : vector<8x32xf32>
      %cst_92 = arith.constant 1.000000e+00 : f32
      %188 = vector.broadcast %cst_92 : f32 to vector<8x32xf32>
      %189 = arith.subf %187, %188 : vector<8x32xf32>
      %190 = vector.extract_strided_slice %174 {offsets = [0, 96], sizes = [8, 32], strides = [1, 1]} : vector<8x128xf32> to vector<8x32xf32>
      %c0_93 = arith.constant 0 : index
      %c0_94 = arith.constant 0 : index
      %191 = vector.load %arg13[%c0_93, %c0_94] : memref<8x32xf32, #tpu.memory_space<vmem>>, vector<8x32xf32>
      %192 = arith.mulf %176, %191 : vector<8x32xf32>
      %193 = arith.mulf %175, %181 : vector<8x32xf32>
      %194 = arith.addf %192, %193 : vector<8x32xf32>
      %c0_95 = arith.constant 0 : index
      %c0_96 = arith.constant 0 : index
      %195 = vector.load %arg14[%c0_95, %c0_96] : memref<8x32xf32, #tpu.memory_space<vmem>>, vector<8x32xf32>
      %196 = arith.mulf %184, %195 : vector<8x32xf32>
      %197 = arith.mulf %183, %189 : vector<8x32xf32>
      %198 = arith.addf %196, %197 : vector<8x32xf32>
      %199 = math.tanh %194 : vector<8x32xf32>
      %200 = arith.mulf %182, %199 : vector<8x32xf32>
      %201 = math.tanh %198 : vector<8x32xf32>
      %202 = arith.mulf %190, %201 : vector<8x32xf32>
      %c0_97 = arith.constant 0 : index
      %c0_98 = arith.constant 0 : index
      %203 = vector.load %arg13[%c0_97, %c0_98] : memref<8x32xf32, #tpu.memory_space<vmem>>, vector<8x32xf32>
      tpu.vector_store %arg13[%c0_97, %c0_98], %194 {strides = array<i32>} : memref<8x32xf32, #tpu.memory_space<vmem>>, vector<8x32xf32>,
      %c0_99 = arith.constant 0 : index
      %c0_100 = arith.constant 0 : index
      %204 = vector.load %arg14[%c0_99, %c0_100] : memref<8x32xf32, #tpu.memory_space<vmem>>, vector<8x32xf32>
      tpu.vector_store %arg14[%c0_99, %c0_100], %198 {strides = array<i32>} : memref<8x32xf32, #tpu.memory_space<vmem>>, vector<8x32xf32>,
      %c0_101 = arith.constant 0 : index
      %c0_102 = arith.constant 0 : index
      %205 = vector.load %arg12[%c0_101, %c0_102] : memref<8x64xf32, #tpu.memory_space<vmem>>, vector<8x32xf32>
      tpu.vector_store %arg12[%c0_101, %c0_102], %200 {strides = array<i32>} : memref<8x64xf32, #tpu.memory_space<vmem>>, vector<8x32xf32>,
      %c0_103 = arith.constant 0 : index
      %c32_104 = arith.constant 32 : index
      %206 = vector.load %arg12[%c0_103, %c32_104] : memref<8x64xf32, #tpu.memory_space<vmem>>, vector<8x32xf32>
      tpu.vector_store %arg12[%c0_103, %c32_104], %202 {strides = array<i32>} : memref<8x64xf32, #tpu.memory_space<vmem>>, vector<8x32xf32>,
      %207 = arith.index_cast %150 : i32 to index
      %c0_105 = arith.constant 0 : index
      %208 = vector.load %arg8[%207, %c0_105] : memref<64x32xf32, #tpu.memory_space<vmem>>, vector<8x32xf32>
      tpu.vector_store %arg8[%207, %c0_105], %200 {strides = array<i32>} : memref<64x32xf32, #tpu.memory_space<vmem>>, vector<8x32xf32>,
      %209 = arith.index_cast %153 : i32 to index
      %c0_106 = arith.constant 0 : index
      %210 = vector.load %arg9[%209, %c0_106] : memref<64x32xf32, #tpu.memory_space<vmem>>, vector<8x32xf32>
      tpu.vector_store %arg9[%209, %c0_106], %202 {strides = array<i32>} : memref<64x32xf32, #tpu.memory_space<vmem>>, vector<8x32xf32>,
      %c4_i32_107 = arith.constant 4 : i32
      %211 = arith.muli %arg15, %c4_i32_107 : i32
      %c3_i32 = arith.constant 3 : i32
      %212 = arith.addi %211, %c3_i32 : i32
      %c8_i32_108 = arith.constant 8 : i32
      %213 = arith.muli %212, %c8_i32_108 : i32
      %214 = tpu.assume_multiple %213, 8 : i32
      %c7_i32_109 = arith.constant 7 : i32
      %215 = arith.subi %c7_i32_109, %212 : i32
      %c8_i32_110 = arith.constant 8 : i32
      %216 = arith.muli %215, %c8_i32_110 : i32
      %217 = tpu.assume_multiple %216, 8 : i32
      %c0_111 = arith.constant 0 : index
      %c0_112 = arith.constant 0 : index
      %218 = vector.load %arg12[%c0_111, %c0_112] : memref<8x64xf32, #tpu.memory_space<vmem>>, vector<8x64xf32>
      %219 = arith.truncf %218 : vector<8x64xf32> to vector<8x64xbf16>
      %cst_113 = arith.constant dense<0.000000e+00> : vector<8x256xf32>
      %220 = tpu.matmul %219, %17, %cst_113 {dimension_numbers = #tpu.dot_dimension_numbers<[1], [0], [0], [1], [0, 0, 1, 1], [], []>} : vector<8x64xbf16>, vector<64x256xbf16>, vector<8x256xf32> -> vector<8x256xf32>
      %221 = arith.index_cast %214 : i32 to index
      %c0_114 = arith.constant 0 : index
      %222 = vector.load %arg10[%221, %c0_114] : memref<64x128xf32, #tpu.memory_space<vmem>>, vector<8x128xf32>
      %223 = vector.extract_strided_slice %220 {offsets = [0, 0], sizes = [8, 128], strides = [1, 1]} : vector<8x256xf32> to vector<8x128xf32>
      %224 = arith.addf %222, %223 : vector<8x128xf32>
      %225 = arith.index_cast %217 : i32 to index
      %c0_115 = arith.constant 0 : index
      %226 = vector.load %arg11[%225, %c0_115] : memref<64x128xf32, #tpu.memory_space<vmem>>, vector<8x128xf32>
      %227 = vector.extract_strided_slice %220 {offsets = [0, 128], sizes = [8, 128], strides = [1, 1]} : vector<8x256xf32> to vector<8x128xf32>
      %228 = arith.addf %226, %227 : vector<8x128xf32>
      %229 = arith.negf %224 : vector<8x128xf32>
      %230 = math.exp %229 : vector<8x128xf32>
      %cst_116 = arith.constant 1.000000e+00 : f32
      %231 = vector.broadcast %cst_116 : f32 to vector<8x128xf32>
      %232 = arith.addf %231, %230 : vector<8x128xf32>
      %233 = arith.divf %231, %232 : vector<8x128xf32>
      %234 = arith.negf %228 : vector<8x128xf32>
      %235 = math.exp %234 : vector<8x128xf32>
      %cst_117 = arith.constant 1.000000e+00 : f32
      %236 = vector.broadcast %cst_117 : f32 to vector<8x128xf32>
      %237 = arith.addf %236, %235 : vector<8x128xf32>
      %238 = arith.divf %236, %237 : vector<8x128xf32>
      %239 = vector.extract_strided_slice %233 {offsets = [0, 0], sizes = [8, 32], strides = [1, 1]} : vector<8x128xf32> to vector<8x32xf32>
      %240 = vector.extract_strided_slice %233 {offsets = [0, 32], sizes = [8, 32], strides = [1, 1]} : vector<8x128xf32> to vector<8x32xf32>
      %241 = vector.extract_strided_slice %233 {offsets = [0, 64], sizes = [8, 32], strides = [1, 1]} : vector<8x128xf32> to vector<8x32xf32>
      %cst_118 = arith.constant 2.000000e+00 : f32
      %242 = vector.broadcast %cst_118 : f32 to vector<8x32xf32>
      %243 = arith.mulf %242, %241 : vector<8x32xf32>
      %cst_119 = arith.constant 1.000000e+00 : f32
      %244 = vector.broadcast %cst_119 : f32 to vector<8x32xf32>
      %245 = arith.subf %243, %244 : vector<8x32xf32>
      %246 = vector.extract_strided_slice %233 {offsets = [0, 96], sizes = [8, 32], strides = [1, 1]} : vector<8x128xf32> to vector<8x32xf32>
      %247 = vector.extract_strided_slice %238 {offsets = [0, 0], sizes = [8, 32], strides = [1, 1]} : vector<8x128xf32> to vector<8x32xf32>
      %248 = vector.extract_strided_slice %238 {offsets = [0, 32], sizes = [8, 32], strides = [1, 1]} : vector<8x128xf32> to vector<8x32xf32>
      %249 = vector.extract_strided_slice %238 {offsets = [0, 64], sizes = [8, 32], strides = [1, 1]} : vector<8x128xf32> to vector<8x32xf32>
      %cst_120 = arith.constant 2.000000e+00 : f32
      %250 = vector.broadcast %cst_120 : f32 to vector<8x32xf32>
      %251 = arith.mulf %250, %249 : vector<8x32xf32>
      %cst_121 = arith.constant 1.000000e+00 : f32
      %252 = vector.broadcast %cst_121 : f32 to vector<8x32xf32>
      %253 = arith.subf %251, %252 : vector<8x32xf32>
      %254 = vector.extract_strided_slice %238 {offsets = [0, 96], sizes = [8, 32], strides = [1, 1]} : vector<8x128xf32> to vector<8x32xf32>
      %c0_122 = arith.constant 0 : index
      %c0_123 = arith.constant 0 : index
      %255 = vector.load %arg13[%c0_122, %c0_123] : memref<8x32xf32, #tpu.memory_space<vmem>>, vector<8x32xf32>
      %256 = arith.mulf %240, %255 : vector<8x32xf32>
      %257 = arith.mulf %239, %245 : vector<8x32xf32>
      %258 = arith.addf %256, %257 : vector<8x32xf32>
      %c0_124 = arith.constant 0 : index
      %c0_125 = arith.constant 0 : index
      %259 = vector.load %arg14[%c0_124, %c0_125] : memref<8x32xf32, #tpu.memory_space<vmem>>, vector<8x32xf32>
      %260 = arith.mulf %248, %259 : vector<8x32xf32>
      %261 = arith.mulf %247, %253 : vector<8x32xf32>
      %262 = arith.addf %260, %261 : vector<8x32xf32>
      %263 = math.tanh %258 : vector<8x32xf32>
      %264 = arith.mulf %246, %263 : vector<8x32xf32>
      %265 = math.tanh %262 : vector<8x32xf32>
      %266 = arith.mulf %254, %265 : vector<8x32xf32>
      %c0_126 = arith.constant 0 : index
      %c0_127 = arith.constant 0 : index
      %267 = vector.load %arg13[%c0_126, %c0_127] : memref<8x32xf32, #tpu.memory_space<vmem>>, vector<8x32xf32>
      tpu.vector_store %arg13[%c0_126, %c0_127], %258 {strides = array<i32>} : memref<8x32xf32, #tpu.memory_space<vmem>>, vector<8x32xf32>,
      %c0_128 = arith.constant 0 : index
      %c0_129 = arith.constant 0 : index
      %268 = vector.load %arg14[%c0_128, %c0_129] : memref<8x32xf32, #tpu.memory_space<vmem>>, vector<8x32xf32>
      tpu.vector_store %arg14[%c0_128, %c0_129], %262 {strides = array<i32>} : memref<8x32xf32, #tpu.memory_space<vmem>>, vector<8x32xf32>,
      %c0_130 = arith.constant 0 : index
      %c0_131 = arith.constant 0 : index
      %269 = vector.load %arg12[%c0_130, %c0_131] : memref<8x64xf32, #tpu.memory_space<vmem>>, vector<8x32xf32>
      tpu.vector_store %arg12[%c0_130, %c0_131], %264 {strides = array<i32>} : memref<8x64xf32, #tpu.memory_space<vmem>>, vector<8x32xf32>,
      %c0_132 = arith.constant 0 : index
      %c32_133 = arith.constant 32 : index
      %270 = vector.load %arg12[%c0_132, %c32_133] : memref<8x64xf32, #tpu.memory_space<vmem>>, vector<8x32xf32>
      tpu.vector_store %arg12[%c0_132, %c32_133], %266 {strides = array<i32>} : memref<8x64xf32, #tpu.memory_space<vmem>>, vector<8x32xf32>,
      %271 = arith.index_cast %214 : i32 to index
      %c0_134 = arith.constant 0 : index
      %272 = vector.load %arg8[%271, %c0_134] : memref<64x32xf32, #tpu.memory_space<vmem>>, vector<8x32xf32>
      tpu.vector_store %arg8[%271, %c0_134], %264 {strides = array<i32>} : memref<64x32xf32, #tpu.memory_space<vmem>>, vector<8x32xf32>,
      %273 = arith.index_cast %217 : i32 to index
      %c0_135 = arith.constant 0 : index
      %274 = vector.load %arg9[%273, %c0_135] : memref<64x32xf32, #tpu.memory_space<vmem>>, vector<8x32xf32>
      tpu.vector_store %arg9[%273, %c0_135], %266 {strides = array<i32>} : memref<64x32xf32, #tpu.memory_space<vmem>>, vector<8x32xf32>,
    }
    %c2_i32_20 = arith.constant 2 : i32
    return
  }
  func.func @transform_0(%arg0: i32) -> (i32, i32) {
    %c0_i32 = arith.constant 0 : i32
    %c0_i32_0 = arith.constant 0 : i32
    return %arg0, %c0_i32 : i32, i32
  }
  func.func @transform_1(%arg0: i32) -> (i32, i32) {
    %c0_i32 = arith.constant 0 : i32
    %0 = arith.subi %c0_i32, %arg0 : i32
    %c0_i32_0 = arith.constant 0 : i32
    %c0_i32_1 = arith.constant 0 : i32
    return %0, %c0_i32_0 : i32, i32
  }
  func.func @transform_2(%arg0: i32) -> (i32, i32) {
    %c0_i32 = arith.constant 0 : i32
    %c0_i32_0 = arith.constant 0 : i32
    %c0_i32_1 = arith.constant 0 : i32
    return %c0_i32, %c0_i32_0 : i32, i32
  }
  func.func @transform_3(%arg0: i32) -> (i32, i32) {
    %c0_i32 = arith.constant 0 : i32
    %c0_i32_0 = arith.constant 0 : i32
    %c0_i32_1 = arith.constant 0 : i32
    return %c0_i32, %c0_i32_0 : i32, i32
  }
  func.func @transform_4(%arg0: i32) -> (i32, i32) {
    %c0_i32 = arith.constant 0 : i32
    %c0_i32_0 = arith.constant 0 : i32
    %c0_i32_1 = arith.constant 0 : i32
    return %c0_i32, %c0_i32_0 : i32, i32
  }
  func.func @transform_5(%arg0: i32) -> (i32, i32) {
    %c0_i32 = arith.constant 0 : i32
    %c0_i32_0 = arith.constant 0 : i32
    %c0_i32_1 = arith.constant 0 : i32
    return %c0_i32, %c0_i32_0 : i32, i32
  }
  func.func @transform_6(%arg0: i32) -> (i32, i32) {
    %c0_i32 = arith.constant 0 : i32
    %c0_i32_0 = arith.constant 0 : i32
    %c0_i32_1 = arith.constant 0 : i32
    return %c0_i32, %c0_i32_0 : i32, i32
  }
  func.func @transform_7(%arg0: i32) -> (i32, i32) {
    %c0_i32 = arith.constant 0 : i32
    %c0_i32_0 = arith.constant 0 : i32
    return %arg0, %c0_i32 : i32, i32
  }
  func.func @transform_8(%arg0: i32) -> (i32, i32) {
    %c0_i32 = arith.constant 0 : i32
    %0 = arith.subi %c0_i32, %arg0 : i32
    %c0_i32_0 = arith.constant 0 : i32
    %c0_i32_1 = arith.constant 0 : i32
    return %0, %c0_i32_0 : i32, i32
  }
}

</mosaic_0001>

<bundles_post_ra>
// kernel: bidirectional_lstm_forward.3
= control target key start
LH: loop header
LB: loop body
LE: loop exit
PB: predicated region body
PF: predicated region fallthrough
CT: control target
= control target key end

     0   :  { %vm65_vm0 = vcmask 261120   ;;  %vm247_vm1 = vcmask 130048   ;;  %s446_s3 = inlined_call_operand.vmem [shape: bf16[32,16], index: 3, kind: input, shape index: {}]   ;;  %s447_s2 = inlined_call_operand.vmem [shape: bf16[32,16], index: 2, kind: input, shape index: {}]   ;;  %s448_s1 = inlined_call_operand.vmem [shape: f32[64,32], index: 1, kind: input, shape index: {}]   ;;  %s449_s0 = inlined_call_operand.vmem [shape: f32[64,32], index: 0, kind: input, shape index: {}]   ;;  %s450_s4 = inlined_call_operand.vmem [shape: f32[1,16], index: 4, kind: input, shape index: {}]   ;;  %s451_s5 = inlined_call_operand.vmem [shape: f32[64,16], index: 5, kind: output, shape index: {}]  }
   0x1   :  { %v309_v0 = vld [vmem:[%s446_s3 + $0x8] sm:$0xff]   ;;  %v311_v2 = vld [vmem:[%s446_s3] sm:$0xff]   ;;  %v39_v9 = vld [vmem:[%s448_s1 + $0x10] sm:$0xff] }
   0x2   :  { %v310_v1 = vld [vmem:[%s447_s2 + $0x8] sm:$0xff]   ;;  %285 = vmatprep.subr.bf16.mxu0 %v309_v0  ;;  %v312_v3 = vld [vmem:[%s447_s2] sm:$0xff]   ;;  %v40_v10 = vld [vmem:[%s448_s1 + $0x18] sm:$0xff] }
   0x3   :  { %297 = vmatprep.subr.bf16.mxu1 %v310_v1  ;;  %286 = vmatpush3.bf16.msra.mxu0 %v309_v0  ;;  %v37_v4 = vld [vmem:[%s448_s1] sm:$0xff]  ;;  %v38_v5 = vld [vmem:[%s448_s1 + $0x8] sm:$0xff]  ;;  %v46_v12 = vpack.c.bf16 %v40_v10, %v39_v9  ;;  %v23_v13 = vld [vmem:[%s449_s0 + $0x10] sm:$0xff] }
   0x4   :  { %298 = vmatpush3.bf16.msra.mxu1 %v310_v1  ;;  %287 = vmatprep.subr.bf16.mxu0 %v311_v2  ;;  %v21_v6 = vld [vmem:[%s449_s0] sm:$0xff]  ;;  %v45_v7 = vpack.c.bf16 %v38_v5, %v37_v4  ;;  %v22_v8 = vld [vmem:[%s449_s0 + $0x8] sm:$0xff]  ;;  %v24_v14 = vld [vmem:[%s449_s0 + $0x18] sm:$0xff] }
   0x5   :  { %299 = vmatprep.subr.bf16.mxu1 %v312_v3  ;;  %v29_v11 = vpack.c.bf16 %v22_v8, %v21_v6  ;;  %v41_v15 = vld [vmem:[%s448_s1 + $0x20] sm:$0xff]  ;;  %v30_v16 = vpack.c.bf16 %v24_v14, %v23_v13  ;;  %v42_v17 = vld [vmem:[%s448_s1 + $0x28] sm:$0xff]  ;;  %v43_v22 = vld [vmem:[%s448_s1 + $0x30] sm:$0xff] }
   0x6   :  { %289 = vmatprep.mubr.msk.bf16.mxu0 %vm65_vm0, %v45_v7  ;;  %v25_v18 = vld [vmem:[%s449_s0 + $0x20] sm:$0xff]  ;;  %v26_v19 = vld [vmem:[%s449_s0 + $0x28] sm:$0xff]  ;;  %v47_v20 = vpack.c.bf16 %v42_v17, %v41_v15  ;;  %v44_v23 = vld [vmem:[%s448_s1 + $0x38] sm:$0xff] }
   0x7   :  { %288 = vmatpush3.bf16.msra.mxu0 %v311_v2  ;;  %301 = vmatprep.mubr.msk.bf16.mxu1 %vm65_vm0, %v29_v11  ;;  %v31_v21 = vpack.c.bf16 %v26_v19, %v25_v18  ;;  %v27_v24 = vld [vmem:[%s449_s0 + $0x30] sm:$0xff]  ;;  %v28_v25 = vld [vmem:[%s449_s0 + $0x38] sm:$0xff]  ;;  %v48_v26 = vpack.c.bf16 %v44_v23, %v43_v22  ;;  %v272_v30 = vld [vmem:[%s450_s4] ss:$0 sm:$0xff] }
   0x8   :  { %300 = vmatpush3.bf16.msra.mxu1 %v312_v3  ;;  %v32_v27 = vpack.c.bf16 %v28_v25, %v27_v24 }
   0xa   :  { %290 = vmatmul.mubr.msk.bf16.vlgmr.msra.gmra.mxu0 %vm65_vm0, %v46_v12 }
   0xb   :  { %302 = vmatmul.mubr.msk.bf16.vlgmr.msra.gmra.mxu1 %vm65_vm0, %v30_v16  ;;  %293 = vmatprep.mubr.msk.bf16.mxu0 %vm65_vm0, %v47_v20 }
   0xc   :  { %305 = vmatprep.mubr.msk.bf16.mxu1 %vm65_vm0, %v31_v21 }
  0x12   :  { %294 = vmatmul.mubr.msk.bf16.gmra.mxu0 %vm65_vm0, %v48_v26 }
  0x13   :  { %306 = vmatmul.mubr.msk.bf16.gmra.mxu1 %vm65_vm0, %v32_v27 }
  0xca   :  { %v291_v28 = vpop.f32.mrf.mxu0 }
  0xcb   :  { %v303_v29 = vpop.f32.mrf.mxu1 }
  0xcc   :  { %v210_v31 = vadd.f32 %v303_v29, %v291_v28  ;;  %v112_v32 = vpop.f32.mrf.mxu0 }
  0xcd   :  { %v201_v33 = vpop.f32.mrf.mxu1 }
  0xce   :  { %v241_v34 = vadd.f32 %v272_v30, %v210_v31  ;;  %v202_v35 = vadd.f32 %v201_v33, %v112_v32  ;;  %v292_v36 = vpop.f32.mrf.mxu0 }
  0xcf   :  { %v304_v37 = vpop.f32.mrf.mxu1 }
  0xd0   :  { %250 = vst.msk [vmem:[%s451_s5 + $0x10] sm:$0xff] %vm247_vm1, %v241_v34  ;;  %v239_v38 = vadd.f32 %v272_v30, %v202_v35  ;;  %v213_v39 = vadd.f32 %v304_v37, %v292_v36  ;;  %v115_v40 = vpop.f32.mrf.mxu0 }
  0xd1   :  { %v204_v41 = vpop.f32.mrf.mxu1 }
  0xd2   :  { %248 = vst.msk [vmem:[%s451_s5] sm:$0xff] %vm247_vm1, %v239_v38  ;;  %v242_v42 = vadd.f32 %v272_v30, %v213_v39  ;;  %v205_v43 = vadd.f32 %v204_v41, %v115_v40  ;;  %v295_v44 = vpop.f32.mrf.mxu0 }
  0xd3   :  { %v307_v45 = vpop.f32.mrf.mxu1 }
  0xd4   :  { %251 = vst.msk [vmem:[%s451_s5 + $0x18] sm:$0xff] %vm247_vm1, %v242_v42  ;;  %v240_v46 = vadd.f32 %v272_v30, %v205_v43  ;;  %v226_v47 = vadd.f32 %v307_v45, %v295_v44  ;;  %v128_v48 = vpop.f32.mrf.mxu0 }
  0xd5   :  { %v217_v49 = vpop.f32.mrf.mxu1 }
  0xd6   :  { %249 = vst.msk [vmem:[%s451_s5 + $0x8] sm:$0xff] %vm247_vm1, %v240_v46  ;;  %v245_v50 = vadd.f32 %v272_v30, %v226_v47  ;;  %v218_v51 = vadd.f32 %v217_v49, %v128_v48  ;;  %v296_v52 = vpop.f32.mrf.mxu0 }
  0xd7   :  { %v308_v53 = vpop.f32.mrf.mxu1 }
  0xd8   :  { %254 = vst.msk [vmem:[%s451_s5 + $0x30] sm:$0xff] %vm247_vm1, %v245_v50  ;;  %v243_v54 = vadd.f32 %v272_v30, %v218_v51  ;;  %v229_v55 = vadd.f32 %v308_v53, %v296_v52  ;;  %v131_v56 = vpop.f32.mrf.mxu0 }
  0xd9   :  { %v220_v57 = vpop.f32.mrf.mxu1 }
  0xda   :  { %252 = vst.msk [vmem:[%s451_s5 + $0x20] sm:$0xff] %vm247_vm1, %v243_v54  ;;  %v246_v58 = vadd.f32 %v272_v30, %v229_v55  ;;  %v221_v59 = vadd.f32 %v220_v57, %v131_v56 }
  0xdc   :  { %255 = vst.msk [vmem:[%s451_s5 + $0x38] sm:$0xff] %vm247_vm1, %v246_v58  ;;  %v244_v60 = vadd.f32 %v272_v30, %v221_v59 }
  0xde   :  { %253 = vst.msk [vmem:[%s451_s5 + $0x28] sm:$0xff] %vm247_vm1, %v244_v60 }

// kernel: bidirectional_lstm_forward.2
= control target key start
LH: loop header
LB: loop body
LE: loop exit
PB: predicated region body
PF: predicated region fallthrough
CT: control target
= control target key end

     0   :  { %vm69_vm0 = vcmask 523264   ;;  %vm71_vm1 = vcmask 261120   ;;  %v1232_v0 = vmov 0.0   ;;  %vm117_vm2 = vcmask 130048   ;;  %s1586_s2 = inlined_call_operand.vmem [shape: bf16[16,128], index: 2, kind: input, shape index: {}]   ;;  %s1587_s7 = inlined_call_operand.vmem [shape: f32[64,32], index: 7, kind: output, shape index: {0}]   ;;  %s1588_s8 = inlined_call_operand.vmem [shape: f32[64,32], index: 8, kind: output, shape index: {1}]   ;;  %s1589_s3 = inlined_call_operand.vmem [shape: bf16[16,128], index: 3, kind: input, shape index: {}]   ;;  %s1590_s0 = inlined_call_operand.vmem [shape: bf16[64,16], index: 0, kind: input, shape index: {}, may-alias: {0,1}]   ;;  %s1591_s1 = inlined_call_operand.vmem [shape: bf16[64,16], index: 1, kind: input, shape index: {}, may-alias: {0,1}]   ;;  %s1592_s6 = inlined_call_operand.vmem [shape: bf16[64,256], index: 6, kind: input, shape index: {}]   ;;  %s1593_s4 = inlined_call_operand.vmem [shape: f32[1,128], index: 4, kind: input, shape index: {}]   ;;  %s1594_s5 = inlined_call_operand.vmem [shape: f32[1,128], index: 5, kind: input, shape index: {}]  }
   0x1   :  { %70 = vst.msk [vmem:[#allocation4] sm:$0xff] %vm69_vm0, %v1232_v0  ;;  %v1166_v1 = vld [vmem:[%s1586_s2] sm:$0xff]   ;;  %v1170_v5 = vld [vmem:[%s1590_s0 + $0x8] sm:$0xff]   ;;  %v1172_v7 = vld [vmem:[%s1590_s0 + $0x10] sm:$0xff]  }
   0x2   :  { %72 = vst.msk [vmem:[#allocation5] sm:$0xff] %vm71_vm1, %v1232_v0  ;;  %73 = vst.msk [vmem:[#allocation6] sm:$0xff] %vm71_vm1, %v1232_v0  ;;  %v1167_v2 = vld [vmem:[%s1589_s3] sm:$0xff]   ;;  %1133 = vmatprep.subr.bf16.mxu0 %v1166_v1  ;;  %v1171_v6 = vld [vmem:[%s1591_s1 + $0x8] sm:$0xff]  }
   0x3   :  { %v1168_v3 = vld [vmem:[%s1590_s0] sm:$0xff]   ;;  %1143 = vmatprep.subr.bf16.mxu1 %v1167_v2  ;;  %1134 = vmatpush3.bf16.msra.mxu0 %v1166_v1  ;;  %v1173_v8 = vld [vmem:[%s1591_s1 + $0x10] sm:$0xff]   ;;  %v1174_v9 = vld [vmem:[%s1590_s0 + $0x18] sm:$0xff]  }
   0x4   :  { %v1169_v4 = vld [vmem:[%s1591_s1] sm:$0xff]   ;;  %1144 = vmatpush3.bf16.msra.mxu1 %v1167_v2  ;;  %1135 = vmatprep.mubr.msk.bf16.mxu0 %vm117_vm2, %v1168_v3  ;;  %v1175_v10 = vld [vmem:[%s1591_s1 + $0x18] sm:$0xff]   ;;  %v1331_v12 = vld [vmem:[%s1592_s6 + $0x8] sm:$0xff] }
   0x5   :  { %1145 = vmatprep.mubr.msk.bf16.mxu1 %vm117_vm2, %v1169_v4  ;;  %v1326_v11 = vld [vmem:[%s1592_s6] sm:$0xff]  ;;  %v1336_v13 = vld [vmem:[%s1592_s6 + $0x10] sm:$0xff]  ;;  %v1341_v14 = vld [vmem:[%s1592_s6 + $0x18] sm:$0xff] }
   0x6   :  { %1136 = vmatmul.mubr.msk.bf16.vlgmr.msra.gmra.mxu0 %vm117_vm2, %v1170_v5  ;;  %v1346_v15 = vld [vmem:[%s1592_s6 + $0x20] sm:$0xff]  ;;  %v1351_v16 = vld [vmem:[%s1592_s6 + $0x28] sm:$0xff]  ;;  %v1356_v17 = vld [vmem:[%s1592_s6 + $0x30] sm:$0xff] }
   0x7   :  { %1146 = vmatmul.mubr.msk.bf16.vlgmr.msra.gmra.mxu1 %vm117_vm2, %v1171_v6  ;;  %1139 = vmatprep.mubr.msk.bf16.mxu0 %vm117_vm2, %v1172_v7  ;;  %v1361_v18 = vld [vmem:[%s1592_s6 + $0x38] sm:$0xff]  ;;  %v1045_v19 = vld [vmem:[%s1593_s4] ss:$0 sm:$0xff]  ;;  %s1369_s4 = smov 0  }
   0x8   :  { %1149 = vmatprep.mubr.msk.bf16.mxu1 %vm117_vm2, %v1173_v8  ;;  %v1055_v20 = vld [vmem:[%s1594_s5] ss:$0 sm:$0xff] }
   0xe   :  { %1140 = vmatmul.mubr.msk.bf16.gmra.mxu0 %vm117_vm2, %v1174_v9 }
   0xf   :  { %1150 = vmatmul.mubr.msk.bf16.gmra.mxu1 %vm117_vm2, %v1175_v10 }
  0xc6   :  { %v1137_v21 = vpop.f32.mrf.mxu0 }
  0xc7   :  { %v173_v22 = vadd.f32 %v1137_v21, %v1045_v19  ;;  %v1147_v23 = vpop.f32.mrf.mxu1 }
  0xc8   :  { %v301_v24 = vadd.f32 %v1147_v23, %v1055_v20  ;;  %v164_v25 = vpop.f32.mrf.mxu0 }
  0xc9   :  { %197 = vst [vmem:[#allocation2 + $0x10] sm:$0xff] %v173_v22  ;;  %v165_v26 = vadd.f32 %v1045_v19, %v164_v25  ;;  %v292_v27 = vpop.f32.mrf.mxu1 }
  0xca   :  { %325 = vst [vmem:[#allocation3 + $0x10] sm:$0xff] %v301_v24  ;;  %v293_v28 = vadd.f32 %v1055_v20, %v292_v27  ;;  %v1138_v29 = vpop.f32.mrf.mxu0 }
  0xcb   :  { %195 = vst [vmem:[#allocation2] sm:$0xff] %v165_v26  ;;  %v176_v30 = vadd.f32 %v1138_v29, %v1045_v19  ;;  %v1148_v31 = vpop.f32.mrf.mxu1 }
  0xcc   :  { %323 = vst [vmem:[#allocation3] sm:$0xff] %v293_v28  ;;  %v304_v32 = vadd.f32 %v1148_v31, %v1055_v20  ;;  %v167_v33 = vpop.f32.mrf.mxu0 }
  0xcd   :  { %198 = vst [vmem:[#allocation2 + $0x18] sm:$0xff] %v176_v30  ;;  %v168_v34 = vadd.f32 %v1045_v19, %v167_v33  ;;  %v295_v35 = vpop.f32.mrf.mxu1 }
  0xce   :  { %326 = vst [vmem:[#allocation3 + $0x18] sm:$0xff] %v304_v32  ;;  %v296_v36 = vadd.f32 %v1055_v20, %v295_v35  ;;  %v1141_v37 = vpop.f32.mrf.mxu0 }
  0xcf   :  { %196 = vst [vmem:[#allocation2 + $0x8] sm:$0xff] %v168_v34  ;;  %v189_v38 = vadd.f32 %v1141_v37, %v1045_v19  ;;  %v1151_v39 = vpop.f32.mrf.mxu1 }
  0xd0   :  { %324 = vst [vmem:[#allocation3 + $0x8] sm:$0xff] %v296_v36  ;;  %v317_v40 = vadd.f32 %v1151_v39, %v1055_v20  ;;  %v180_v41 = vpop.f32.mrf.mxu0 }
  0xd1   :  { %201 = vst [vmem:[#allocation2 + $0x30] sm:$0xff] %v189_v38  ;;  %v181_v42 = vadd.f32 %v1045_v19, %v180_v41  ;;  %v308_v43 = vpop.f32.mrf.mxu1 }
  0xd2   :  { %329 = vst [vmem:[#allocation3 + $0x30] sm:$0xff] %v317_v40  ;;  %v309_v44 = vadd.f32 %v1055_v20, %v308_v43  ;;  %v1142_v45 = vpop.f32.mrf.mxu0 }
  0xd3   :  { %199 = vst [vmem:[#allocation2 + $0x20] sm:$0xff] %v181_v42  ;;  %v192_v46 = vadd.f32 %v1142_v45, %v1045_v19  ;;  %v1152_v47 = vpop.f32.mrf.mxu1 }
  0xd4   :  { %327 = vst [vmem:[#allocation3 + $0x20] sm:$0xff] %v309_v44  ;;  %v320_v48 = vadd.f32 %v1152_v47, %v1055_v20  ;;  %v183_v49 = vpop.f32.mrf.mxu0 }
  0xd5   :  { %202 = vst [vmem:[#allocation2 + $0x38] sm:$0xff] %v192_v46  ;;  %v184_v50 = vadd.f32 %v1045_v19, %v183_v49  ;;  %v311_v51 = vpop.f32.mrf.mxu1 }
  0xd6   :  { %330 = vst [vmem:[#allocation3 + $0x38] sm:$0xff] %v320_v48  ;;  %v312_v52 = vadd.f32 %v1055_v20, %v311_v51 }
  0xd7   :  { %200 = vst [vmem:[#allocation2 + $0x28] sm:$0xff] %v184_v50 }
  0xd8   :  { %328 = vst [vmem:[#allocation3 + $0x28] sm:$0xff] %v312_v52 }
  0xd9 LB: > { %v1075_v53 = vcombine.high %v1356_v17, %v1361_v18  ;;  %v1378_v54 = vcombine.low %v1356_v17, %v1361_v18  ;;  %v1382_v55 = vcombine.high %v1346_v15, %v1351_v16  ;;  %v458_v56 = vld [vmem:[#allocation5] sm:$0xff]  ;;  %s1233_s5 = smov 32   ;;  %v474_v57 = vld [vmem:[#allocation6] sm:$0xff]  ;;  %v1388_v58 = vcombine.low %v1346_v15, %v1351_v16  ;;  %v349_v0 = vld [vmem:[#allocation4] sm:$0xff]  ;;  %s1432_s6 = sshll.u32 %s1230_s4, 2  ;;  %s1230_s4 = sphi %s1369_s4, %s344_s4  }
  0xda   : > { %460 = vrot.lane.b32.xlu1 %v458_v56, %s1233_s5  ;;  %v1234_v59 = vmov 0   ;;  %v1394_v60 = vcombine.high %v1336_v13, %v1341_v14  ;;  %v1403_v61 = vcombine.low %v1336_v13, %v1341_v14  ;;  %v1408_v62 = vcombine.high %v1326_v11, %v1331_v12  ;;  %s347_s17 = ssub.s32 7, %s1432_s6  ;;  %s1066_s18 = sshll.u32 %s1230_s4, 5 }
  0xdb   : > { %403 = vmatprep.subr.bf16.mxu0 %v1075_v53  ;;  %548 = vmatprep.subr.bf16.mxu1 %v1075_v53  ;;  %v1415_v63 = vcombine.low %v1326_v11, %v1331_v12  ;;  %v350_v1 = vpack.c.bf16 %v349_v0, %v349_v0  ;;  %s1436_s19 = sshll.u32 %s347_s17, 3  ;;  %s1440_s20 = scalar_lea.vmem [#allocation2], %s1066_s18  ;;  %vm522_vm3 = vcmask 523520  }
  0xdc   : > { %404 = vmatpush1.bf16.msra.mxu0 %v1378_v54  ;;  %427 = vmatprep.mubr.bf16.mxu0 %v1234_v59  ;;  %s439_s21 = scalar_lea.vmem [#allocation3], %s1436_s19  ;;  %s1235_s22 = smov 64  }
  0xdd   : > { %405 = vmatprep.subr.bf16.mxu0 %v1382_v55  ;;  %549 = vmatpush1.bf16.msra.mxu1 %v1378_v54  ;;  %s1236_s23 = smov 96   ;;  %s1462_s26 = scalar_lea.vmem %s1587_s7, %s1066_s18 }
  0xde   : > { %476 = vrot.lane.b32.xlu1 %v474_v57, %s1233_s5  ;;  %550 = vmatprep.subr.bf16.mxu1 %v1382_v55  ;;  %v437_v2 = vld [vmem:[%s1440_s20] sm:$0xff]  ;;  %s533_s27 = ssub.s32 6, %s1432_s6  ;;  %v1085_v56 = vld [vmem:[%s1440_s20 + $0x8] sm:$0xff]  ;;  %s676_s28 = ssub.s32 5, %s1432_s6 }
  0xdf   : > { %572 = vmatprep.mubr.bf16.mxu1 %v1234_v59  ;;  %v440_v4 = vld [vmem:[%s439_s21] sm:$0xff]  ;;  %s1480_s0 = sshll.u32 %s533_s27, 3  ;;  %s1507_s29 = sshll.u32 %s676_s28, 3 }
  0xe0   : > { %406 = vmatpush1.bf16.msra.mxu0 %v1388_v58  ;;  %s584_s1 = scalar_lea.vmem [#allocation3], %s1480_s0  ;;  %s727_s30 = scalar_lea.vmem [#allocation3], %s1507_s29 }
  0xe1   : > { %407 = vmatprep.subr.bf16.mxu0 %v1394_v60  ;;  %551 = vmatpush1.bf16.msra.mxu1 %v1388_v58  ;;  %v585_v57 = vld [vmem:[%s584_s1] sm:$0xff]  ;;  %s819_s9 = ssub.s32 4, %s1432_s6  ;;  %s529_s13 = scalar_lea.vmem %s1588_s8, %s1436_s19 }
  0xe2   : > { %552 = vmatprep.subr.bf16.mxu1 %v1394_v60  ;;  %s1534_s10 = sshll.u32 %s819_s9, 3  ;;  %s672_s15 = scalar_lea.vmem %s1588_s8, %s1480_s0 }
  0xe3   : > { %s870_s11 = scalar_lea.vmem [#allocation3], %s1534_s10  ;;  %s815_s17 = scalar_lea.vmem %s1588_s8, %s1507_s29 }
  0xe4   : > { %408 = vmatpush1.bf16.msra.mxu0 %v1403_v61  ;;  %s344_s4 = sadd.s32 1, %s1230_s4  }
  0xe5   : > { %409 = vmatprep.subr.bf16.mxu0 %v1408_v62  ;;  %553 = vmatpush1.bf16.msra.mxu1 %v1403_v61  ;;  %p341_p0 = scmp.ge.s32.totalorder %s344_s4, 2  }
  0xe6   : > { %554 = vmatprep.subr.bf16.mxu1 %v1408_v62 }
  0xe8   : > { %410 = vmatpush1.bf16.msra.mxu0 %v1415_v63 }
  0xe9   : > { %555 = vmatpush1.bf16.msra.mxu1 %v1415_v63  ;;  %691 = vmatprep.subr.bf16.mxu0 %v1075_v53 }
  0xea   : > { %834 = vmatprep.subr.bf16.mxu1 %v1075_v53 }
  0xeb   : > { %1076 = vmatmul.mubr.msk.bf16.vlgmr.msra.gmra.mxu0 %vm69_vm0, %v350_v1 }
  0xec   : > { %692 = vmatpush1.bf16.msra.mxu0 %v1378_v54  ;;  %715 = vmatprep.mubr.bf16.mxu0 %v1234_v59 }
  0xed   : > { %693 = vmatprep.subr.bf16.mxu0 %v1382_v55 }
  0xf0   : > { %694 = vmatpush1.bf16.msra.mxu0 %v1388_v58 }
  0xf1   : > { %695 = vmatprep.subr.bf16.mxu0 %v1394_v60 }
  0xf4   : > { %696 = vmatpush1.bf16.msra.mxu0 %v1403_v61 }
  0xf5   : > { %697 = vmatprep.subr.bf16.mxu0 %v1408_v62 }
  0xf8   : > { %698 = vmatpush1.bf16.msra.mxu0 %v1415_v63 }
 0x14c   : > { %v461_v34 = vpop.permute.xlu1 %460 }
 0x150   : > { %v477_v36 = vpop.permute.xlu1 %476 }
 0x1ab   : > { %v429_v3 = vpop.f32.mrf.mxu0 }
 0x1ac   : > { %v438_v5 = vadd.f32 %v437_v2, %v429_v3 }
 0x1ad   : > { %v431_v6 = vpop.f32.mrf.mxu0 }
 0x1ae   : > { %v1077_v7 = vmul.f32 -1.442695, %v438_v5  ;;  %v441_v8 = vadd.f32 %v440_v4, %v431_v6 }
 0x1af   : > { %v433_v9 = vpop.f32.mrf.mxu0 }
 0x1b0   : > { %1176 = vpow2.f32 %v1077_v7  ;;  %v1078_v10 = vmul.f32 -1.442695, %v441_v8 }
 0x1b1   : > { %v434_v19 = vpop.f32.mrf.mxu0 }
 0x1b2   : > { %1178 = vpow2.f32 %v1078_v10 }
 0x1bd   : > { %v1177_v20 = vpop.eup %1176 }
 0x1be   : > { %v445_v21 = vadd.f32 1.0, %v1177_v20 }
 0x1bf   : > { %v1179_v22 = vpop.eup %1178 }
 0x1c0   : > { %1180 = vrcp.f32 %v445_v21  ;;  %v451_v23 = vadd.f32 1.0, %v1179_v22 }
 0x1c2   : > { %1182 = vrcp.f32 %v451_v23 }
 0x1cd   : > { %v1181_v24 = vpop.eup %1180 }
 0x1ce   : > { %v454_v25 = vmul.f32 2.0, %v1181_v24  ;;  %v463_v35 = vmul.f32 %v1181_v24, %v461_v34 }
 0x1cf   : > { %v1183_v26 = vpop.eup %1182 }
 0x1d0   : > { %v1079_v27 = vadd.f32 -1.0, %v454_v25  ;;  %v456_v28 = vmul.f32 2.0, %v1183_v26  ;;  %v479_v39 = vmul.f32 %v1183_v26, %v477_v36 }
 0x1d2   : > { %465 = vrot.lane.b32.xlu0 %v1079_v27, %s1235_s22  ;;  %v1080_v29 = vadd.f32 -1.0, %v456_v28 }
 0x1d6   : > { %481 = vrot.lane.b32.xlu0 %v1080_v29, %s1235_s22 }
 0x244   : > { %v466_v30 = vpop.permute.xlu0 %465 }
 0x245   : > { %v468_v31 = vmul.f32 %v1181_v24, %v466_v30 }
 0x247   : > { %470 = vrot.lane.b32.xlu0 %v468_v31, %s1233_s5 }
 0x248   : > { %v482_v32 = vpop.permute.xlu0 %481 }
 0x249   : > { %v484_v33 = vmul.f32 %v1183_v26, %v482_v32 }
 0x24b   : > { %486 = vrot.lane.b32.xlu1 %v484_v33, %s1233_s5 }
 0x2b9   : > { %v471_v37 = vpop.permute.xlu0 %470 }
 0x2ba   : > { %v473_v38 = vadd.f32 %v471_v37, %v463_v35 }
 0x2bc   : > { %1184 = vtanh.f32 %v473_v38 }
 0x2bd   : > { %v487_v40 = vpop.permute.xlu1 %486 }
 0x2be   : > { %v489_v41 = vadd.f32 %v487_v40, %v479_v39 }
 0x2c0   : > { %1186 = vtanh.f32 %v489_v41 }
 0x2c9   : > { %v1185_v42 = vpop.eup %1184 }
 0x2ca   : > { %492 = vrot.lane.b32.xlu0 %v1185_v42, %s1235_s22 }
 0x2cd   : > { %v1187_v43 = vpop.eup %1186 }
 0x2ce   : > { %498 = vrot.lane.b32.xlu1 %v1187_v43, %s1235_s22 }
 0x33c   : > { %v493_v44 = vpop.permute.xlu0 %492 }
 0x33d   : > { %v495_v45 = vmul.f32 %v1181_v24, %v493_v44  ;;  %v1097_v44 = vld [vmem:[%s1440_s20 + $0x10] sm:$0xff] }
 0x33f   : > { %514 = vrot.lane.b32.xlu0 %v495_v45, %s1233_s5 }
 0x340   : > { %v499_v46 = vpop.permute.xlu1 %498 }
 0x341   : > { %v1451_v47 = vmul.f32 %v1183_v26, %v499_v46  ;;  %v728_v46 = vld [vmem:[%s727_s30] sm:$0xff] }
 0x343   : > { %519 = vrot.lane.b32.xlu1 %v1451_v47, %s1235_s22  ;;  %503 = vrot.lane.b32.xlu0 %v473_v38, %s1236_s23 }
 0x347   : > { %509 = vrot.lane.b32.xlu1 %v489_v41, %s1236_s23 }
 0x3b1   : > { %v515_v48 = vpop.permute.xlu0 %514 }
 0x3b2   : > { %517 = vst.msk [vmem:[#allocation4] sm:$0xff] %vm71_vm1, %v515_v48  ;;  %525 = vst.msk [vmem:[%s1462_s26] sm:$0xff] %vm71_vm1, %v515_v48 }
 0x3b5   : > { %v520_v49 = vpop.permute.xlu1 %519  ;;  %v504_v50 = vpop.permute.xlu0 %503 }
 0x3b6   : > { %523 = vst.msk [vmem:[#allocation4] sm:$0xff] %vm522_vm3, %v520_v49 }
 0x3b7   : > { %507 = vst.msk [vmem:[#allocation5] sm:$0xff] %vm71_vm1, %v504_v50 }
 0x3b9   : > { %v510_v51 = vpop.permute.xlu1 %509 }
 0x3ba   : > { %512 = vst.msk [vmem:[#allocation6] sm:$0xff] %vm71_vm1, %v510_v51 }
 0x3bd   : > { %v535_v52 = vld [vmem:[#allocation4] sm:$0xff] }
 0x3be   : > { %v536_v53 = vpack.c.bf16 %v535_v52, %v535_v52  ;;  %v603_v10 = vld [vmem:[#allocation5] sm:$0xff] }
 0x3c0   : > { %1082 = vmatmul.mubr.msk.bf16.vlgmr.msra.gmra.mxu1 %vm69_vm0, %v536_v53 }
 0x3c1   : > { %835 = vmatpush1.bf16.msra.mxu1 %v1378_v54  ;;  %858 = vmatprep.mubr.bf16.mxu1 %v1234_v59  ;;  %v619_v19 = vld [vmem:[#allocation6] sm:$0xff] }
 0x3c2   : > { %836 = vmatprep.subr.bf16.mxu1 %v1382_v55 }
 0x3c5   : > { %837 = vmatpush1.bf16.msra.mxu1 %v1388_v58 }
 0x3c6   : > { %838 = vmatprep.subr.bf16.mxu1 %v1394_v60 }
 0x3c9   : > { %839 = vmatpush1.bf16.msra.mxu1 %v1403_v61 }
 0x3ca   : > { %840 = vmatprep.subr.bf16.mxu1 %v1408_v62 }
 0x3cd   : > { %841 = vmatpush1.bf16.msra.mxu1 %v1415_v63 }
 0x480   : > { %v574_v54 = vpop.f32.mrf.mxu1 }
 0x481   : > { %v583_v59 = vadd.f32 %v1085_v56, %v574_v54 }
 0x482   : > { %v576_v55 = vpop.f32.mrf.mxu1 }
 0x483   : > { %v1086_v0 = vmul.f32 -1.442695, %v583_v59  ;;  %v586_v58 = vadd.f32 %v585_v57, %v576_v55 }
 0x484   : > { %v578_v1 = vpop.f32.mrf.mxu1 }
 0x485   : > { %1188 = vpow2.f32 %v1086_v0  ;;  %v1087_v60 = vmul.f32 -1.442695, %v586_v58 }
 0x486   : > { %v579_v61 = vpop.f32.mrf.mxu1 }
 0x487   : > { %1190 = vpow2.f32 %v1087_v60 }
 0x492   : > { %v1189_v62 = vpop.eup %1188 }
 0x493   : > { %v590_v2 = vadd.f32 1.0, %v1189_v62 }
 0x494   : > { %v1191_v63 = vpop.eup %1190 }
 0x495   : > { %1192 = vrcp.f32 %v590_v2  ;;  %v596_v3 = vadd.f32 1.0, %v1191_v63 }
 0x497   : > { %1194 = vrcp.f32 %v596_v3 }
 0x4a2   : > { %v1193_v4 = vpop.eup %1192 }
 0x4a3   : > { %v599_v5 = vmul.f32 2.0, %v1193_v4 }
 0x4a4   : > { %v1195_v6 = vpop.eup %1194 }
 0x4a5   : > { %v1088_v7 = vadd.f32 -1.0, %v599_v5  ;;  %v601_v8 = vmul.f32 2.0, %v1195_v6 }
 0x4a7   : > { %610 = vrot.lane.b32.xlu0 %v1088_v7, %s1235_s22  ;;  %v1089_v9 = vadd.f32 -1.0, %v601_v8 }
 0x4a9   : > { %626 = vrot.lane.b32.xlu1 %v1089_v9, %s1235_s22 }
 0x4ab   : > { %605 = vrot.lane.b32.xlu0 %v603_v10, %s1233_s5 }
 0x4ad   : > { %621 = vrot.lane.b32.xlu1 %v619_v19, %s1233_s5 }
 0x519   : > { %v611_v20 = vpop.permute.xlu0 %610 }
 0x51a   : > { %v613_v21 = vmul.f32 %v1193_v4, %v611_v20 }
 0x51b   : > { %v627_v22 = vpop.permute.xlu1 %626 }
 0x51c   : > { %v629_v23 = vmul.f32 %v1195_v6, %v627_v22  ;;  %615 = vrot.lane.b32.xlu0 %v613_v21, %s1233_s5 }
 0x51d   : > { %v606_v24 = vpop.permute.xlu0 %605 }
 0x51e   : > { %631 = vrot.lane.b32.xlu1 %v629_v23, %s1233_s5  ;;  %v608_v26 = vmul.f32 %v1193_v4, %v606_v24 }
 0x51f   : > { %v622_v25 = vpop.permute.xlu1 %621 }
 0x520   : > { %v624_v28 = vmul.f32 %v1195_v6, %v622_v25 }
 0x58e   : > { %v616_v27 = vpop.permute.xlu0 %615 }
 0x58f   : > { %v618_v29 = vadd.f32 %v616_v27, %v608_v26 }
 0x590   : > { %v632_v30 = vpop.permute.xlu1 %631 }
 0x591   : > { %1196 = vtanh.f32 %v618_v29  ;;  %v634_v31 = vadd.f32 %v632_v30, %v624_v28 }
 0x593   : > { %1198 = vtanh.f32 %v634_v31 }
 0x59e   : > { %v1197_v32 = vpop.eup %1196 }
 0x59f   : > { %637 = vrot.lane.b32.xlu0 %v1197_v32, %s1235_s22 }
 0x5a0   : > { %v1199_v33 = vpop.eup %1198 }
 0x5a1   : > { %643 = vrot.lane.b32.xlu1 %v1199_v33, %s1235_s22 }
 0x611   : > { %v638_v34 = vpop.permute.xlu0 %637 }
 0x612   : > { %v640_v35 = vmul.f32 %v1193_v4, %v638_v34 }
 0x613   : > { %v644_v36 = vpop.permute.xlu1 %643 }
 0x614   : > { %v1492_v37 = vmul.f32 %v1195_v6, %v644_v36  ;;  %658 = vrot.lane.b32.xlu0 %v640_v35, %s1233_s5  ;;  %v1109_v35 = vld [vmem:[%s1440_s20 + $0x18] sm:$0xff]  ;;  %s958_s20 = scalar_lea.vmem %s1588_s8, %s1534_s10 }
 0x616   : > { %663 = vrot.lane.b32.xlu1 %v1492_v37, %s1235_s22 }
 0x618   : > { %648 = vrot.lane.b32.xlu0 %v618_v29, %s1236_s23 }
 0x61a   : > { %653 = vrot.lane.b32.xlu1 %v634_v31, %s1236_s23 }
 0x686   : > { %v659_v38 = vpop.permute.xlu0 %658 }
 0x687   : > { %661 = vst.msk [vmem:[#allocation4] sm:$0xff] %vm71_vm1, %v659_v38  ;;  %1092 = vst.msk [vmem:[%s1462_s26 + $0x8] sm:$0xff] %vm71_vm1, %v659_v38  ;;  %v871_v38 = vld [vmem:[%s870_s11] sm:$0xff] }
 0x688   : > { %v664_v39 = vpop.permute.xlu1 %663 }
 0x689   : > { %666 = vst.msk [vmem:[#allocation4] sm:$0xff] %vm522_vm3, %v664_v39 }
 0x68a   : > { %v649_v40 = vpop.permute.xlu0 %648 }
 0x68b   : > { %651 = vst.msk [vmem:[#allocation5] sm:$0xff] %vm71_vm1, %v649_v40 }
 0x68c   : > { %v654_v41 = vpop.permute.xlu1 %653 }
 0x68d   : > { %656 = vst.msk [vmem:[#allocation6] sm:$0xff] %vm71_vm1, %v654_v41 }
 0x690   : > { %v678_v42 = vld [vmem:[#allocation4] sm:$0xff] }
 0x691   : > { %v679_v43 = vpack.c.bf16 %v678_v42, %v678_v42 }
 0x692   : > { %v746_v2 = vld [vmem:[#allocation5] sm:$0xff] }
 0x693   : > { %1094 = vmatmul.mubr.msk.bf16.vlgmr.msra.gmra.mxu0 %vm69_vm0, %v679_v43 }
 0x694   : > { %v762_v63 = vld [vmem:[#allocation6] sm:$0xff] }
 0x753   : > { %v717_v45 = vpop.f32.mrf.mxu0 }
 0x754   : > { %v726_v48 = vadd.f32 %v1097_v44, %v717_v45 }
 0x755   : > { %v719_v49 = vpop.f32.mrf.mxu0 }
 0x756   : > { %v1098_v50 = vmul.f32 -1.442695, %v726_v48  ;;  %v729_v51 = vadd.f32 %v728_v46, %v719_v49 }
 0x757   : > { %v721_v52 = vpop.f32.mrf.mxu0 }
 0x758   : > { %1200 = vpow2.f32 %v1098_v50  ;;  %v1099_v53 = vmul.f32 -1.442695, %v729_v51 }
 0x759   : > { %v722_v56 = vpop.f32.mrf.mxu0 }
 0x75a   : > { %1202 = vpow2.f32 %v1099_v53 }
 0x765   : > { %v1201_v54 = vpop.eup %1200 }
 0x766   : > { %v733_v57 = vadd.f32 1.0, %v1201_v54 }
 0x767   : > { %v1203_v59 = vpop.eup %1202 }
 0x768   : > { %1204 = vrcp.f32 %v733_v57  ;;  %v739_v55 = vadd.f32 1.0, %v1203_v59 }
 0x76a   : > { %1206 = vrcp.f32 %v739_v55 }
 0x775   : > { %v1205_v0 = vpop.eup %1204 }
 0x776   : > { %v742_v58 = vmul.f32 2.0, %v1205_v0 }
 0x777   : > { %v1207_v1 = vpop.eup %1206 }
 0x778   : > { %v1100_v60 = vadd.f32 -1.0, %v742_v58  ;;  %v744_v61 = vmul.f32 2.0, %v1207_v1 }
 0x77a   : > { %753 = vrot.lane.b32.xlu0 %v1100_v60, %s1235_s22  ;;  %v1101_v62 = vadd.f32 -1.0, %v744_v61 }
 0x77c   : > { %769 = vrot.lane.b32.xlu1 %v1101_v62, %s1235_s22 }
 0x77e   : > { %748 = vrot.lane.b32.xlu0 %v746_v2, %s1233_s5 }
 0x780   : > { %764 = vrot.lane.b32.xlu1 %v762_v63, %s1233_s5 }
 0x7ec   : > { %v754_v3 = vpop.permute.xlu0 %753 }
 0x7ed   : > { %v756_v4 = vmul.f32 %v1205_v0, %v754_v3 }
 0x7ee   : > { %v770_v5 = vpop.permute.xlu1 %769 }
 0x7ef   : > { %v772_v6 = vmul.f32 %v1207_v1, %v770_v5  ;;  %758 = vrot.lane.b32.xlu0 %v756_v4, %s1233_s5 }
 0x7f0   : > { %v749_v7 = vpop.permute.xlu0 %748 }
 0x7f1   : > { %774 = vrot.lane.b32.xlu1 %v772_v6, %s1233_s5  ;;  %v751_v9 = vmul.f32 %v1205_v0, %v749_v7 }
 0x7f2   : > { %v765_v8 = vpop.permute.xlu1 %764 }
 0x7f3   : > { %v767_v19 = vmul.f32 %v1207_v1, %v765_v8 }
 0x861   : > { %v759_v10 = vpop.permute.xlu0 %758 }
 0x862   : > { %v761_v20 = vadd.f32 %v759_v10, %v751_v9 }
 0x863   : > { %v775_v21 = vpop.permute.xlu1 %774 }
 0x864   : > { %1208 = vtanh.f32 %v761_v20  ;;  %v777_v22 = vadd.f32 %v775_v21, %v767_v19 }
 0x866   : > { %1210 = vtanh.f32 %v777_v22 }
 0x871   : > { %v1209_v23 = vpop.eup %1208 }
 0x872   : > { %780 = vrot.lane.b32.xlu0 %v1209_v23, %s1235_s22 }
 0x873   : > { %v1211_v24 = vpop.eup %1210 }
 0x874   : > { %786 = vrot.lane.b32.xlu1 %v1211_v24, %s1235_s22 }
 0x8e4   : > { %v781_v25 = vpop.permute.xlu0 %780 }
 0x8e5   : > { %v783_v26 = vmul.f32 %v1205_v0, %v781_v25 }
 0x8e6   : > { %v787_v27 = vpop.permute.xlu1 %786 }
 0x8e7   : > { %v1519_v28 = vmul.f32 %v1207_v1, %v787_v27  ;;  %801 = vrot.lane.b32.xlu0 %v783_v26, %s1233_s5 }
 0x8e9   : > { %806 = vrot.lane.b32.xlu1 %v1519_v28, %s1235_s22 }
 0x8eb   : > { %791 = vrot.lane.b32.xlu0 %v761_v20, %s1236_s23 }
 0x8ed   : > { %796 = vrot.lane.b32.xlu1 %v777_v22, %s1236_s23 }
 0x959   : > { %v802_v29 = vpop.permute.xlu0 %801 }
 0x95a   : > { %804 = vst.msk [vmem:[#allocation4] sm:$0xff] %vm71_vm1, %v802_v29  ;;  %1104 = vst.msk [vmem:[%s1462_s26 + $0x10] sm:$0xff] %vm71_vm1, %v802_v29 }
 0x95b   : > { %v807_v30 = vpop.permute.xlu1 %806 }
 0x95c   : > { %809 = vst.msk [vmem:[#allocation4] sm:$0xff] %vm522_vm3, %v807_v30 }
 0x95d   : > { %v792_v31 = vpop.permute.xlu0 %791 }
 0x95e   : > { %794 = vst.msk [vmem:[#allocation5] sm:$0xff] %vm71_vm1, %v792_v31 }
 0x95f   : > { %v797_v32 = vpop.permute.xlu1 %796 }
 0x960   : > { %799 = vst.msk [vmem:[#allocation6] sm:$0xff] %vm71_vm1, %v797_v32 }
 0x963   : > { %v821_v33 = vld [vmem:[#allocation4] sm:$0xff] }
 0x964   : > { %v822_v34 = vpack.c.bf16 %v821_v33, %v821_v33 }
 0x965   : > { %v889_v59 = vld [vmem:[#allocation5] sm:$0xff] }
 0x966   : > { %1106 = vmatmul.mubr.msk.bf16.vlgmr.msra.gmra.mxu1 %vm69_vm0, %v822_v34 }
 0x967   : > { %v905_v55 = vld [vmem:[#allocation6] sm:$0xff] }
 0xa26   : > { %v860_v36 = vpop.f32.mrf.mxu1 }
 0xa27   : > { %v869_v39 = vadd.f32 %v1109_v35, %v860_v36 }
 0xa28   : > { %v862_v40 = vpop.f32.mrf.mxu1 }
 0xa29   : > { %v1110_v41 = vmul.f32 -1.442695, %v869_v39  ;;  %v872_v42 = vadd.f32 %v871_v38, %v862_v40 }
 0xa2a   : > { %v864_v43 = vpop.f32.mrf.mxu1 }
 0xa2b   : > { %1212 = vpow2.f32 %v1110_v41  ;;  %v1111_v44 = vmul.f32 -1.442695, %v872_v42 }
 0xa2c   : > { %v865_v45 = vpop.f32.mrf.mxu1 }
 0xa2d   : > { %1214 = vpow2.f32 %v1111_v44 }
 0xa38   : > { %v1213_v46 = vpop.eup %1212 }
 0xa39   : > { %v876_v48 = vadd.f32 1.0, %v1213_v46 }
 0xa3a   : > { %v1215_v49 = vpop.eup %1214 }
 0xa3b   : > { %1216 = vrcp.f32 %v876_v48  ;;  %v882_v50 = vadd.f32 1.0, %v1215_v49 }
 0xa3d   : > { %1218 = vrcp.f32 %v882_v50 }
 0xa48   : > { %v1217_v51 = vpop.eup %1216 }
 0xa49   : > { %v885_v52 = vmul.f32 2.0, %v1217_v51 }
 0xa4a   : > { %v1219_v53 = vpop.eup %1218 }
 0xa4b   : > { %v1112_v56 = vadd.f32 -1.0, %v885_v52  ;;  %v887_v54 = vmul.f32 2.0, %v1219_v53 }
 0xa4d   : > { %896 = vrot.lane.b32.xlu0 %v1112_v56, %s1235_s22  ;;  %v1113_v57 = vadd.f32 -1.0, %v887_v54 }
 0xa4f   : > { %912 = vrot.lane.b32.xlu1 %v1113_v57, %s1235_s22 }
 0xa51   : > { %891 = vrot.lane.b32.xlu0 %v889_v59, %s1233_s5 }
 0xa53   : > { %907 = vrot.lane.b32.xlu1 %v905_v55, %s1233_s5 }
 0xabf   : > { %v897_v0 = vpop.permute.xlu0 %896 }
 0xac0   : > { %v899_v58 = vmul.f32 %v1217_v51, %v897_v0 }
 0xac1   : > { %v913_v1 = vpop.permute.xlu1 %912 }
 0xac2   : > { %v915_v60 = vmul.f32 %v1219_v53, %v913_v1  ;;  %901 = vrot.lane.b32.xlu0 %v899_v58, %s1233_s5 }
 0xac3   : > { %v892_v61 = vpop.permute.xlu0 %891 }
 0xac4   : > { %917 = vrot.lane.b32.xlu1 %v915_v60, %s1233_s5  ;;  %v894_v2 = vmul.f32 %v1217_v51, %v892_v61 }
 0xac5   : > { %v908_v62 = vpop.permute.xlu1 %907 }
 0xac6   : > { %v910_v3 = vmul.f32 %v1219_v53, %v908_v62 }
 0xb34   : > { %v902_v63 = vpop.permute.xlu0 %901 }
 0xb35   : > { %v904_v4 = vadd.f32 %v902_v63, %v894_v2 }
 0xb36   : > { %v918_v5 = vpop.permute.xlu1 %917 }
 0xb37   : > { %1220 = vtanh.f32 %v904_v4  ;;  %v920_v6 = vadd.f32 %v918_v5, %v910_v3 }
 0xb39   : > { %1222 = vtanh.f32 %v920_v6 }
 0xb44   : > { %v1221_v7 = vpop.eup %1220 }
 0xb45   : > { %923 = vrot.lane.b32.xlu0 %v1221_v7, %s1235_s22 }
 0xb46   : > { %v1223_v8 = vpop.eup %1222 }
 0xb47   : > { %929 = vrot.lane.b32.xlu1 %v1223_v8, %s1235_s22 }
 0xb49   : > { %526 = vrot.lane.b32.xlu0 %v1451_v47, %s1233_s5 }
 0xb4b   : > { %669 = vrot.lane.b32.xlu1 %v1492_v37, %s1233_s5 }
 0xb4d   : > { %812 = vrot.lane.b32.xlu0 %v1519_v28, %s1233_s5 }
 0xb4f   : > { %939 = vrot.lane.b32.xlu1 %v920_v6, %s1236_s23 }
 0xb51   : > { %934 = vrot.lane.b32.xlu0 %v904_v4, %s1236_s23 }
 0xbb7   : > { %v924_v9 = vpop.permute.xlu0 %923 }
 0xbb8   : > { %v926_v10 = vmul.f32 %v1217_v51, %v924_v9 }
 0xbb9   : > { %v930_v19 = vpop.permute.xlu1 %929 }
 0xbba   : > { %v932_v20 = vmul.f32 %v1219_v53, %v930_v19  ;;  %944 = vrot.lane.b32.xlu1 %v926_v10, %s1233_s5 }
 0xbbb   : > { %v527_v47 = vpop.permute.xlu0 %526 }
 0xbbc   : > { %530 = vst.msk [vmem:[%s529_s13] sm:$0xff] %vm71_vm1, %v527_v47  ;;  %949 = vrot.lane.b32.xlu0 %v932_v20, %s1235_s22 }
 0xbbd   : > { %v670_v37 = vpop.permute.xlu1 %669 }
 0xbbe   : > { %673 = vst.msk [vmem:[%s672_s15] sm:$0xff] %vm71_vm1, %v670_v37  ;;  %955 = vrot.lane.b32.xlu1 %v932_v20, %s1233_s5 }
 0xbbf   : > { %v813_v21 = vpop.permute.xlu0 %812 }
 0xbc0   : > { %816 = vst.msk [vmem:[%s815_s17] sm:$0xff] %vm71_vm1, %v813_v21 }
 0xbc1   : > { %v940_v22 = vpop.permute.xlu1 %939 }
 0xbc2   : > { %942 = vst.msk [vmem:[#allocation6] sm:$0xff] %vm71_vm1, %v940_v22 }
 0xbc3   : > { %v935_v23 = vpop.permute.xlu0 %934 }
 0xbc4   : > { %937 = vst.msk [vmem:[#allocation5] sm:$0xff] %vm71_vm1, %v935_v23 }
 0xc2c   : > { %v945_v24 = vpop.permute.xlu1 %944 }
 0xc2d   : > { %947 = vst.msk [vmem:[#allocation4] sm:$0xff] %vm71_vm1, %v945_v24  ;;  %1116 = vst.msk [vmem:[%s1462_s26 + $0x18] sm:$0xff] %vm71_vm1, %v945_v24 }
 0xc2e   : > { %v950_v25 = vpop.permute.xlu0 %949 }
 0xc2f   : > { %952 = vst.msk [vmem:[#allocation4] sm:$0xff] %vm522_vm3, %v950_v25 }
 0xc30   : > { %v956_v26 = vpop.permute.xlu1 %955 }
 0xc31   : > { %959 = vst.msk [vmem:[%s958_s20] sm:$0xff] %vm71_vm1, %v956_v26 }
 0xc32   :  { %343 = sbr.rel (!%p341_p0) target bundleno = 217 (0xd9), region = 90 }

</bundles_post_ra>
